<compile_context>
chip_gen: v7x
topology: tpu7x:2x2x1
jax: 0.10.0
libtpu: 0.0.40
codegen_flags: <defaults>
</compile_context>

<pallas_src>
import math

import jax
import jax.numpy as jnp
from jax.experimental import pallas as pl
from jax.experimental.pallas import tpu as pltpu


# ----------------------------------------------------------------------------
# Fused kernel: GRU recurrence + masked fused TransformerAttn + sum over time
# + output Linear.  x is passed pre-flattened as (T*Bp, D_in), time-major
# (row = t*Bp + b), batch padded to Bp (multiple of 8).
# ----------------------------------------------------------------------------
def embed_atten_seq_kernel(x_ref, meta_ref,
                           wih_ref, whh_ref, bi_ref, bhn_ref,
                           wvqk_ref, bvqk_ref,
                           woh_ref, wom_ref, bo_ref,
                           out_ref, h_final_ref,
                           lat_ref):
    TB = x_ref.shape[0]
    Bp, H = h_final_ref.shape
    T = TB // Bp
    f32 = jnp.float32
    NEG = jnp.float32(-1e30)

    # ---------------- Phase 1: GRU ----------------
    # Hoisted input projection for all T*Bp rows, all 3 gates in one matmul.
    # bi_ref already contains b_ih + [b_hr, b_hz, 0] (b_hn stays in the loop).
    gi = jnp.dot(x_ref[...], wih_ref[...], preferred_element_type=f32) + bi_ref[...]
    whh = whh_ref[...]                                   # (H, 3H), gates r|z|n
    bhn = bhn_ref[...]                                   # (1, H)

    h = jnp.zeros((Bp, H), f32)
    for t in range(T):                                   # fully unrolled (T static)
        lo = t * Bp
        gh = jnp.dot(h, whh, preferred_element_type=f32)   # one MXU push / step
        gi_t = gi[lo:lo + Bp, :]
        r = jax.nn.sigmoid(gi_t[:, 0:H] + gh[:, 0:H])
        z = jax.nn.sigmoid(gi_t[:, H:2 * H] + gh[:, H:2 * H])
        n = jnp.tanh(gi_t[:, 2 * H:3 * H] + r * (gh[:, 2 * H:3 * H] + bhn))
        h = (1.0 - z) * n + z * h
        lat_ref[lo:lo + Bp, :] = h                       # time-major scratch write

    h_final_ref[...] = h                                 # written exactly once

    # -------- Phase 2: fused TransformerAttn + sum over time + out Linear ----
    latent = lat_ref[...]                                # (T*Bp, H), time-major
    # V|Q|K in one matmul; Q weight/bias already pre-scaled by 1/sqrt(H).
    vqk = jnp.dot(latent, wvqk_ref[...], preferred_element_type=f32) + bvqk_ref[...]
    value = vqk[:, 0:H]
    query = vqk[:, H:2 * H]
    keys = vqk[:, 2 * H:3 * H]

    # One (TB, TB) score matmul; valid only where rows belong to the same batch
    # (time-major layout => same batch iff i % Bp == j % Bp).
    scores = jax.lax.dot_general(value, query, (((1,), (1,)), ((), ())),
                                 preferred_element_type=f32)          # (TB, TB)
    rows = jax.lax.broadcasted_iota(jnp.int32, (TB, TB), 0)
    cols = jax.lax.broadcasted_iota(jnp.int32, (TB, TB), 1)
    same_batch = (rows % Bp) == (cols % Bp)
    scores = jnp.where(same_batch, scores, NEG)

    scores = scores - jnp.max(scores, axis=-1, keepdims=True)
    pexp = jnp.exp(scores)
    denom = jnp.sum(pexp, axis=-1, keepdims=True)
    inv = pl.reciprocal(denom, approx=True)              # EUP slot
    inv = inv * (2.0 - denom * inv)                      # one Newton step -> f32 exact
    w = pexp * inv                                       # softmax over keys

    attn = jnp.dot(w, keys, preferred_element_type=f32)  # (TB, H)

    # latent_sum[b] = sum_t attn[t*Bp + b]: tiny selection-matrix matmul.
    srow = jax.lax.broadcasted_iota(jnp.int32, (Bp, TB), 0)
    scol = jax.lax.broadcasted_iota(jnp.int32, (Bp, TB), 1)
    sel = ((scol % Bp) == srow).astype(f32)              # (Bp, TB)
    latent_sum = jnp.dot(sel, attn, preferred_element_type=f32)       # (Bp, H)

    # out = tanh([latent_sum, metadata] @ W_out^T + b): split matmul avoids an
    # in-kernel concat of activations with metadata.
    out = jnp.tanh(
        jnp.dot(latent_sum, woh_ref[...], preferred_element_type=f32)
        + jnp.dot(meta_ref[...], wom_ref[...], preferred_element_type=f32)
        + bo_ref[...])
    out_ref[...] = out.astype(out_ref.dtype)


# ----------------------------------------------------------------------------
# Param packing: natural (gate-split) params -> kernel layout
#   * gates stacked r|z|n along lanes (width 3H = 120 <= 128, one MXU pass)
#   * b_hr / b_hz folded into the input-projection bias
#   * V|Q|K weights stacked, Q pre-scaled by 1/sqrt(H)
# ----------------------------------------------------------------------------
def pack_params(p):
    H = p["whh_g"].shape[-1]
    wih_s = jnp.concatenate([p["wih_g"][0], p["wih_g"][1], p["wih_g"][2]], axis=1)
    whh_s = jnp.concatenate([p["whh_g"][0], p["whh_g"][1], p["whh_g"][2]], axis=1)
    bi_fold = jnp.concatenate([p["bih_g"][0] + p["bhh_g"][0],
                               p["bih_g"][1] + p["bhh_g"][1],
                               p["bih_g"][2]], axis=1)               # (1, 3H)
    bhn = p["bhh_g"][2]                                              # (1, H)
    scale = 1.0 / math.sqrt(H)
    wvqk = jnp.concatenate([p["wv_t"], p["wq_t"] * scale, p["wk_t"]], axis=1)
    bvqk = jnp.concatenate([p["bv"], p["bq"] * scale, p["bk"]], axis=1)
    return wih_s, whh_s, bi_fold, bhn, wvqk, bvqk


# ----------------------------------------------------------------------------
# Wrapper: EmbedAttenSeq.forward(seqs, metadata) -> (out, encoder_hidden)
# ----------------------------------------------------------------------------
def embed_atten_seq_forward(seqs, metadata, p):
    T, B, D_in = seqs.shape
    H = p["whh_g"].shape[-1]
    O = p["bo"].shape[-1]

    # Pad batch to a full sublane tile so every per-step slice/store is aligned.
    Bp = max(8, ((B + 7) // 8) * 8)
    pad = Bp - B
    seqs_p = jnp.pad(seqs, ((0, 0), (0, pad), (0, 0)))
    meta_p = jnp.pad(metadata, ((0, pad), (0, 0)))
    x_flat = seqs_p.reshape(T * Bp, D_in)                # time-major; cheap reshape

    wih_s, whh_s, bi_fold, bhn, wvqk, bvqk = pack_params(p)

    vmem = pl.BlockSpec(memory_space=pltpu.MemorySpace.VMEM)
    out, h_final = pl.pallas_call(
        embed_atten_seq_kernel,
        out_shape=(jax.ShapeDtypeStruct((Bp, O), jnp.float32),
                   jax.ShapeDtypeStruct((Bp, H), jnp.float32)),
        in_specs=[vmem] * 11,
        out_specs=(vmem, vmem),
        scratch_shapes=[pltpu.VMEM((T * Bp, H), jnp.float32)],
    )(x_flat, meta_p,
      wih_s, whh_s, bi_fold, bhn,
      wvqk, bvqk,
      p["woh_t"], p["wom_t"], p["bo"])

    # Slice the batch padding back off; hidden returned as (1, B, H) like PyTorch.
    return out[:B], h_final[:B][None]


# ----------------------------------------------------------------------------
# Pure-JAX reference (numeric check) — uses the natural (gate-split) params.
# ----------------------------------------------------------------------------
def reference_forward(seqs, metadata, p):
    H = p["whh_g"].shape[-1]

    def step(h, x_t):
        gi_r = x_t @ p["wih_g"][0] + p["bih_g"][0]
        gi_z = x_t @ p["wih_g"][1] + p["bih_g"][1]
        gi_n = x_t @ p["wih_g"][2] + p["bih_g"][2]
        gh_r = h @ p["whh_g"][0] + p["bhh_g"][0]
        gh_z = h @ p["whh_g"][1] + p["bhh_g"][1]
        gh_n = h @ p["whh_g"][2] + p["bhh_g"][2]
        r = jax.nn.sigmoid(gi_r + gh_r)
        z = jax.nn.sigmoid(gi_z + gh_z)
        n = jnp.tanh(gi_n + r * gh_n)
        h_new = (1.0 - z) * n + z * h
        return h_new, h_new

    h0 = jnp.zeros((seqs.shape[1], H), jnp.float32)
    h_final, latent = jax.lax.scan(step, h0, seqs)
    seq_in = jnp.transpose(latent, (1, 0, 2))            # (B, T, H)
    value = seq_in @ p["wv_t"] + p["bv"][0]
    query = seq_in @ p["wq_t"] + p["bq"][0]
    keys = seq_in @ p["wk_t"] + p["bk"][0]
    weights = jnp.einsum("bto,bso->bts", value, query) / math.sqrt(H)
    weights = jax.nn.softmax(weights, axis=-1)
    attn = jnp.einsum("bts,bsh->bth", weights, keys)
    latent_sum = attn.sum(axis=1)                        # (B, H)
    out = jnp.tanh(latent_sum @ p["woh_t"] + metadata @ p["wom_t"] + p["bo"][0])
    return out, h_final[None]


def make_params(key, dim_seq_in, dim_metadata, rnn_out, dim_out):
    H = rnn_out
    ks = jax.random.split(key, 12)
    u = lambda k, shape, s=0.2: jax.random.uniform(k, shape, jnp.float32, -s, s)
    return dict(
        # GRU weights, gate-split (gate order r, z, n), pre-transposed:
        # wih_g[g] corresponds to W_ih[g*H:(g+1)*H, :].T.
        wih_g=u(ks[0], (3, dim_seq_in, H)),
        whh_g=u(ks[1], (3, H, H)),
        bih_g=u(ks[2], (3, 1, H)),
        bhh_g=u(ks[3], (3, 1, H)),
        # TransformerAttn linears (pre-transposed)
        wv_t=u(ks[4], (H, H)), bv=u(ks[5], (1, H)),
        wq_t=u(ks[6], (H, H)), bq=u(ks[7], (1, H)),
        wk_t=u(ks[8], (H, H)), bk=u(ks[9], (1, H)),
        # output Linear over [latent_sum, metadata]: split into H-part / M-part
        woh_t=u(ks[10], (H, dim_out)),
        wom_t=u(ks[11], (dim_metadata, dim_out)),
        bo=jnp.full((1, dim_out), 0.01, jnp.float32),    # bias fill 0.01 (init_weights)
        # TODO(synk): nn.Dropout(p=0.0) is identity at inference; omitted.
    )


if __name__ == "__main__":
    T, B = 8, 4
    dim_seq_in, dim_metadata, rnn_out, dim_out = 5, 3, 40, 50

    key = jax.random.PRNGKey(0)
    kp, kx, km = jax.random.split(key, 3)
    params = make_params(kp, dim_seq_in, dim_metadata, rnn_out, dim_out)
    seqs = jax.random.normal(kx, (T, B, dim_seq_in), jnp.float32)
    metadata = jax.random.normal(km, (B, dim_metadata), jnp.float32)

    out, enc_hidden = embed_atten_seq_forward(seqs, metadata, params)
    out = jax.block_until_ready(out)
    enc_hidden = jax.block_until_ready(enc_hidden)

    ref_out, ref_hidden = reference_forward(seqs, metadata, params)
    assert out.shape == (B, dim_out) and enc_hidden.shape == (1, B, rnn_out)
    assert jnp.allclose(out, ref_out, atol=2e-3, rtol=2e-3), "output mismatch"
    assert jnp.allclose(enc_hidden, ref_hidden, atol=2e-3, rtol=2e-3), "hidden mismatch"

    print("KERNEL_OK")
</pallas_src>

<mosaic_0001>
module attributes {stable_mosaic.version = 11 : i64} {
  func.func @embed_atten_seq_kernel(%arg0: memref<64x5xf32, #tpu.memory_space<vmem>>, %arg1: memref<8x3xf32, #tpu.memory_space<vmem>>, %arg2: memref<5x120xf32, #tpu.memory_space<vmem>>, %arg3: memref<40x120xf32, #tpu.memory_space<vmem>>, %arg4: memref<1x120xf32, #tpu.memory_space<vmem>>, %arg5: memref<1x40xf32, #tpu.memory_space<vmem>>, %arg6: memref<40x120xf32, #tpu.memory_space<vmem>>, %arg7: memref<1x120xf32, #tpu.memory_space<vmem>>, %arg8: memref<40x50xf32, #tpu.memory_space<vmem>>, %arg9: memref<3x50xf32, #tpu.memory_space<vmem>>, %arg10: memref<1x50xf32, #tpu.memory_space<vmem>>, %arg11: memref<8x50xf32, #tpu.memory_space<vmem>>, %arg12: memref<8x40xf32, #tpu.memory_space<vmem>>, %arg13: memref<64x40xf32, #tpu.memory_space<vmem>>) attributes {dimension_semantics = [], scalar_prefetch = 0 : i64, scratch_operands = 1 : i64, tpu.core_type = #tpu.core_type<tc>} {
    %c0 = arith.constant 0 : index
    %c0_0 = arith.constant 0 : index
    %0 = vector.load %arg0[%c0, %c0_0] : memref<64x5xf32, #tpu.memory_space<vmem>>, vector<64x5xf32>
    %c0_1 = arith.constant 0 : index
    %c0_2 = arith.constant 0 : index
    %1 = vector.load %arg2[%c0_1, %c0_2] : memref<5x120xf32, #tpu.memory_space<vmem>>, vector<5x120xf32>
    %cst = arith.constant dense<0.000000e+00> : vector<64x120xf32>
    %2 = tpu.matmul %0, %1, %cst {dimension_numbers = #tpu.dot_dimension_numbers<[1], [0], [0], [1], [0, 0, 1, 1], [], []>} : vector<64x5xf32>, vector<5x120xf32>, vector<64x120xf32> -> vector<64x120xf32>
    %c0_3 = arith.constant 0 : index
    %c0_4 = arith.constant 0 : index
    %3 = vector.load %arg4[%c0_3, %c0_4] : memref<1x120xf32, #tpu.memory_space<vmem>>, vector<1x120xf32>
    %4 = vector.broadcast %3 : vector<1x120xf32> to vector<64x120xf32>
    %5 = arith.addf %2, %4 : vector<64x120xf32>
    %c0_5 = arith.constant 0 : index
    %c0_6 = arith.constant 0 : index
    %6 = vector.load %arg3[%c0_5, %c0_6] : memref<40x120xf32, #tpu.memory_space<vmem>>, vector<40x120xf32>
    %c0_7 = arith.constant 0 : index
    %c0_8 = arith.constant 0 : index
    %7 = vector.load %arg5[%c0_7, %c0_8] : memref<1x40xf32, #tpu.memory_space<vmem>>, vector<1x40xf32>
    %cst_9 = arith.constant 0.000000e+00 : f32
    %8 = vector.broadcast %cst_9 : f32 to vector<8x40xf32>
    %cst_10 = arith.constant dense<0.000000e+00> : vector<8x120xf32>
    %9 = tpu.matmul %8, %6, %cst_10 {dimension_numbers = #tpu.dot_dimension_numbers<[1], [0], [0], [1], [0, 0, 1, 1], [], []>} : vector<8x40xf32>, vector<40x120xf32>, vector<8x120xf32> -> vector<8x120xf32>
    %10 = vector.extract_strided_slice %5 {offsets = [0, 0], sizes = [8, 120], strides = [1, 1]} : vector<64x120xf32> to vector<8x120xf32>
    %11 = vector.extract_strided_slice %10 {offsets = [0, 0], sizes = [8, 40], strides = [1, 1]} : vector<8x120xf32> to vector<8x40xf32>
    %12 = vector.extract_strided_slice %9 {offsets = [0, 0], sizes = [8, 40], strides = [1, 1]} : vector<8x120xf32> to vector<8x40xf32>
    %13 = arith.addf %11, %12 : vector<8x40xf32>
    %14 = arith.negf %13 : vector<8x40xf32>
    %15 = math.exp %14 : vector<8x40xf32>
    %cst_11 = arith.constant 1.000000e+00 : f32
    %16 = vector.broadcast %cst_11 : f32 to vector<8x40xf32>
    %17 = arith.addf %16, %15 : vector<8x40xf32>
    %18 = arith.divf %16, %17 : vector<8x40xf32>
    %19 = vector.extract_strided_slice %10 {offsets = [0, 40], sizes = [8, 40], strides = [1, 1]} : vector<8x120xf32> to vector<8x40xf32>
    %20 = vector.extract_strided_slice %9 {offsets = [0, 40], sizes = [8, 40], strides = [1, 1]} : vector<8x120xf32> to vector<8x40xf32>
    %21 = arith.addf %19, %20 : vector<8x40xf32>
    %22 = arith.negf %21 : vector<8x40xf32>
    %23 = math.exp %22 : vector<8x40xf32>
    %cst_12 = arith.constant 1.000000e+00 : f32
    %24 = vector.broadcast %cst_12 : f32 to vector<8x40xf32>
    %25 = arith.addf %24, %23 : vector<8x40xf32>
    %26 = arith.divf %24, %25 : vector<8x40xf32>
    %27 = vector.extract_strided_slice %10 {offsets = [0, 80], sizes = [8, 40], strides = [1, 1]} : vector<8x120xf32> to vector<8x40xf32>
    %28 = vector.extract_strided_slice %9 {offsets = [0, 80], sizes = [8, 40], strides = [1, 1]} : vector<8x120xf32> to vector<8x40xf32>
    %29 = vector.broadcast %7 : vector<1x40xf32> to vector<8x40xf32>
    %30 = arith.addf %28, %29 : vector<8x40xf32>
    %31 = arith.mulf %18, %30 : vector<8x40xf32>
    %32 = arith.addf %27, %31 : vector<8x40xf32>
    %33 = math.tanh %32 : vector<8x40xf32>
    %cst_13 = arith.constant 1.000000e+00 : f32
    %34 = vector.broadcast %cst_13 : f32 to vector<8x40xf32>
    %35 = arith.subf %34, %26 : vector<8x40xf32>
    %36 = arith.mulf %35, %33 : vector<8x40xf32>
    %37 = arith.mulf %26, %8 : vector<8x40xf32>
    %38 = arith.addf %36, %37 : vector<8x40xf32>
    %c0_14 = arith.constant 0 : index
    %c0_15 = arith.constant 0 : index
    %39 = vector.load %arg13[%c0_14, %c0_15] : memref<64x40xf32, #tpu.memory_space<vmem>>, vector<8x40xf32>
    tpu.vector_store %arg13[%c0_14, %c0_15], %38 {strides = array<i32>} : memref<64x40xf32, #tpu.memory_space<vmem>>, vector<8x40xf32>,
    %cst_16 = arith.constant dense<0.000000e+00> : vector<8x120xf32>
    %40 = tpu.matmul %38, %6, %cst_16 {dimension_numbers = #tpu.dot_dimension_numbers<[1], [0], [0], [1], [0, 0, 1, 1], [], []>} : vector<8x40xf32>, vector<40x120xf32>, vector<8x120xf32> -> vector<8x120xf32>
    %41 = vector.extract_strided_slice %5 {offsets = [8, 0], sizes = [8, 120], strides = [1, 1]} : vector<64x120xf32> to vector<8x120xf32>
    %42 = vector.extract_strided_slice %41 {offsets = [0, 0], sizes = [8, 40], strides = [1, 1]} : vector<8x120xf32> to vector<8x40xf32>
    %43 = vector.extract_strided_slice %40 {offsets = [0, 0], sizes = [8, 40], strides = [1, 1]} : vector<8x120xf32> to vector<8x40xf32>
    %44 = arith.addf %42, %43 : vector<8x40xf32>
    %45 = arith.negf %44 : vector<8x40xf32>
    %46 = math.exp %45 : vector<8x40xf32>
    %cst_17 = arith.constant 1.000000e+00 : f32
    %47 = vector.broadcast %cst_17 : f32 to vector<8x40xf32>
    %48 = arith.addf %47, %46 : vector<8x40xf32>
    %49 = arith.divf %47, %48 : vector<8x40xf32>
    %50 = vector.extract_strided_slice %41 {offsets = [0, 40], sizes = [8, 40], strides = [1, 1]} : vector<8x120xf32> to vector<8x40xf32>
    %51 = vector.extract_strided_slice %40 {offsets = [0, 40], sizes = [8, 40], strides = [1, 1]} : vector<8x120xf32> to vector<8x40xf32>
    %52 = arith.addf %50, %51 : vector<8x40xf32>
    %53 = arith.negf %52 : vector<8x40xf32>
    %54 = math.exp %53 : vector<8x40xf32>
    %cst_18 = arith.constant 1.000000e+00 : f32
    %55 = vector.broadcast %cst_18 : f32 to vector<8x40xf32>
    %56 = arith.addf %55, %54 : vector<8x40xf32>
    %57 = arith.divf %55, %56 : vector<8x40xf32>
    %58 = vector.extract_strided_slice %41 {offsets = [0, 80], sizes = [8, 40], strides = [1, 1]} : vector<8x120xf32> to vector<8x40xf32>
    %59 = vector.extract_strided_slice %40 {offsets = [0, 80], sizes = [8, 40], strides = [1, 1]} : vector<8x120xf32> to vector<8x40xf32>
    %60 = vector.broadcast %7 : vector<1x40xf32> to vector<8x40xf32>
    %61 = arith.addf %59, %60 : vector<8x40xf32>
    %62 = arith.mulf %49, %61 : vector<8x40xf32>
    %63 = arith.addf %58, %62 : vector<8x40xf32>
    %64 = math.tanh %63 : vector<8x40xf32>
    %cst_19 = arith.constant 1.000000e+00 : f32
    %65 = vector.broadcast %cst_19 : f32 to vector<8x40xf32>
    %66 = arith.subf %65, %57 : vector<8x40xf32>
    %67 = arith.mulf %66, %64 : vector<8x40xf32>
    %68 = arith.mulf %57, %38 : vector<8x40xf32>
    %69 = arith.addf %67, %68 : vector<8x40xf32>
    %c8 = arith.constant 8 : index
    %c0_20 = arith.constant 0 : index
    %70 = vector.load %arg13[%c8, %c0_20] : memref<64x40xf32, #tpu.memory_space<vmem>>, vector<8x40xf32>
    tpu.vector_store %arg13[%c8, %c0_20], %69 {strides = array<i32>} : memref<64x40xf32, #tpu.memory_space<vmem>>, vector<8x40xf32>,
    %cst_21 = arith.constant dense<0.000000e+00> : vector<8x120xf32>
    %71 = tpu.matmul %69, %6, %cst_21 {dimension_numbers = #tpu.dot_dimension_numbers<[1], [0], [0], [1], [0, 0, 1, 1], [], []>} : vector<8x40xf32>, vector<40x120xf32>, vector<8x120xf32> -> vector<8x120xf32>
    %72 = vector.extract_strided_slice %5 {offsets = [16, 0], sizes = [8, 120], strides = [1, 1]} : vector<64x120xf32> to vector<8x120xf32>
    %73 = vector.extract_strided_slice %72 {offsets = [0, 0], sizes = [8, 40], strides = [1, 1]} : vector<8x120xf32> to vector<8x40xf32>
    %74 = vector.extract_strided_slice %71 {offsets = [0, 0], sizes = [8, 40], strides = [1, 1]} : vector<8x120xf32> to vector<8x40xf32>
    %75 = arith.addf %73, %74 : vector<8x40xf32>
    %76 = arith.negf %75 : vector<8x40xf32>
    %77 = math.exp %76 : vector<8x40xf32>
    %cst_22 = arith.constant 1.000000e+00 : f32
    %78 = vector.broadcast %cst_22 : f32 to vector<8x40xf32>
    %79 = arith.addf %78, %77 : vector<8x40xf32>
    %80 = arith.divf %78, %79 : vector<8x40xf32>
    %81 = vector.extract_strided_slice %72 {offsets = [0, 40], sizes = [8, 40], strides = [1, 1]} : vector<8x120xf32> to vector<8x40xf32>
    %82 = vector.extract_strided_slice %71 {offsets = [0, 40], sizes = [8, 40], strides = [1, 1]} : vector<8x120xf32> to vector<8x40xf32>
    %83 = arith.addf %81, %82 : vector<8x40xf32>
    %84 = arith.negf %83 : vector<8x40xf32>
    %85 = math.exp %84 : vector<8x40xf32>
    %cst_23 = arith.constant 1.000000e+00 : f32
    %86 = vector.broadcast %cst_23 : f32 to vector<8x40xf32>
    %87 = arith.addf %86, %85 : vector<8x40xf32>
    %88 = arith.divf %86, %87 : vector<8x40xf32>
    %89 = vector.extract_strided_slice %72 {offsets = [0, 80], sizes = [8, 40], strides = [1, 1]} : vector<8x120xf32> to vector<8x40xf32>
    %90 = vector.extract_strided_slice %71 {offsets = [0, 80], sizes = [8, 40], strides = [1, 1]} : vector<8x120xf32> to vector<8x40xf32>
    %91 = vector.broadcast %7 : vector<1x40xf32> to vector<8x40xf32>
    %92 = arith.addf %90, %91 : vector<8x40xf32>
    %93 = arith.mulf %80, %92 : vector<8x40xf32>
    %94 = arith.addf %89, %93 : vector<8x40xf32>
    %95 = math.tanh %94 : vector<8x40xf32>
    %cst_24 = arith.constant 1.000000e+00 : f32
    %96 = vector.broadcast %cst_24 : f32 to vector<8x40xf32>
    %97 = arith.subf %96, %88 : vector<8x40xf32>
    %98 = arith.mulf %97, %95 : vector<8x40xf32>
    %99 = arith.mulf %88, %69 : vector<8x40xf32>
    %100 = arith.addf %98, %99 : vector<8x40xf32>
    %c16 = arith.constant 16 : index
    %c0_25 = arith.constant 0 : index
    %101 = vector.load %arg13[%c16, %c0_25] : memref<64x40xf32, #tpu.memory_space<vmem>>, vector<8x40xf32>
    tpu.vector_store %arg13[%c16, %c0_25], %100 {strides = array<i32>} : memref<64x40xf32, #tpu.memory_space<vmem>>, vector<8x40xf32>,
    %cst_26 = arith.constant dense<0.000000e+00> : vector<8x120xf32>
    %102 = tpu.matmul %100, %6, %cst_26 {dimension_numbers = #tpu.dot_dimension_numbers<[1], [0], [0], [1], [0, 0, 1, 1], [], []>} : vector<8x40xf32>, vector<40x120xf32>, vector<8x120xf32> -> vector<8x120xf32>
    %103 = vector.extract_strided_slice %5 {offsets = [24, 0], sizes = [8, 120], strides = [1, 1]} : vector<64x120xf32> to vector<8x120xf32>
    %104 = vector.extract_strided_slice %103 {offsets = [0, 0], sizes = [8, 40], strides = [1, 1]} : vector<8x120xf32> to vector<8x40xf32>
    %105 = vector.extract_strided_slice %102 {offsets = [0, 0], sizes = [8, 40], strides = [1, 1]} : vector<8x120xf32> to vector<8x40xf32>
    %106 = arith.addf %104, %105 : vector<8x40xf32>
    %107 = arith.negf %106 : vector<8x40xf32>
    %108 = math.exp %107 : vector<8x40xf32>
    %cst_27 = arith.constant 1.000000e+00 : f32
    %109 = vector.broadcast %cst_27 : f32 to vector<8x40xf32>
    %110 = arith.addf %109, %108 : vector<8x40xf32>
    %111 = arith.divf %109, %110 : vector<8x40xf32>
    %112 = vector.extract_strided_slice %103 {offsets = [0, 40], sizes = [8, 40], strides = [1, 1]} : vector<8x120xf32> to vector<8x40xf32>
    %113 = vector.extract_strided_slice %102 {offsets = [0, 40], sizes = [8, 40], strides = [1, 1]} : vector<8x120xf32> to vector<8x40xf32>
    %114 = arith.addf %112, %113 : vector<8x40xf32>
    %115 = arith.negf %114 : vector<8x40xf32>
    %116 = math.exp %115 : vector<8x40xf32>
    %cst_28 = arith.constant 1.000000e+00 : f32
    %117 = vector.broadcast %cst_28 : f32 to vector<8x40xf32>
    %118 = arith.addf %117, %116 : vector<8x40xf32>
    %119 = arith.divf %117, %118 : vector<8x40xf32>
    %120 = vector.extract_strided_slice %103 {offsets = [0, 80], sizes = [8, 40], strides = [1, 1]} : vector<8x120xf32> to vector<8x40xf32>
    %121 = vector.extract_strided_slice %102 {offsets = [0, 80], sizes = [8, 40], strides = [1, 1]} : vector<8x120xf32> to vector<8x40xf32>
    %122 = vector.broadcast %7 : vector<1x40xf32> to vector<8x40xf32>
    %123 = arith.addf %121, %122 : vector<8x40xf32>
    %124 = arith.mulf %111, %123 : vector<8x40xf32>
    %125 = arith.addf %120, %124 : vector<8x40xf32>
    %126 = math.tanh %125 : vector<8x40xf32>
    %cst_29 = arith.constant 1.000000e+00 : f32
    %127 = vector.broadcast %cst_29 : f32 to vector<8x40xf32>
    %128 = arith.subf %127, %119 : vector<8x40xf32>
    %129 = arith.mulf %128, %126 : vector<8x40xf32>
    %130 = arith.mulf %119, %100 : vector<8x40xf32>
    %131 = arith.addf %129, %130 : vector<8x40xf32>
    %c24 = arith.constant 24 : index
    %c0_30 = arith.constant 0 : index
    %132 = vector.load %arg13[%c24, %c0_30] : memref<64x40xf32, #tpu.memory_space<vmem>>, vector<8x40xf32>
    tpu.vector_store %arg13[%c24, %c0_30], %131 {strides = array<i32>} : memref<64x40xf32, #tpu.memory_space<vmem>>, vector<8x40xf32>,
    %cst_31 = arith.constant dense<0.000000e+00> : vector<8x120xf32>
    %133 = tpu.matmul %131, %6, %cst_31 {dimension_numbers = #tpu.dot_dimension_numbers<[1], [0], [0], [1], [0, 0, 1, 1], [], []>} : vector<8x40xf32>, vector<40x120xf32>, vector<8x120xf32> -> vector<8x120xf32>
    %134 = vector.extract_strided_slice %5 {offsets = [32, 0], sizes = [8, 120], strides = [1, 1]} : vector<64x120xf32> to vector<8x120xf32>
    %135 = vector.extract_strided_slice %134 {offsets = [0, 0], sizes = [8, 40], strides = [1, 1]} : vector<8x120xf32> to vector<8x40xf32>
    %136 = vector.extract_strided_slice %133 {offsets = [0, 0], sizes = [8, 40], strides = [1, 1]} : vector<8x120xf32> to vector<8x40xf32>
    %137 = arith.addf %135, %136 : vector<8x40xf32>
    %138 = arith.negf %137 : vector<8x40xf32>
    %139 = math.exp %138 : vector<8x40xf32>
    %cst_32 = arith.constant 1.000000e+00 : f32
    %140 = vector.broadcast %cst_32 : f32 to vector<8x40xf32>
    %141 = arith.addf %140, %139 : vector<8x40xf32>
    %142 = arith.divf %140, %141 : vector<8x40xf32>
    %143 = vector.extract_strided_slice %134 {offsets = [0, 40], sizes = [8, 40], strides = [1, 1]} : vector<8x120xf32> to vector<8x40xf32>
    %144 = vector.extract_strided_slice %133 {offsets = [0, 40], sizes = [8, 40], strides = [1, 1]} : vector<8x120xf32> to vector<8x40xf32>
    %145 = arith.addf %143, %144 : vector<8x40xf32>
    %146 = arith.negf %145 : vector<8x40xf32>
    %147 = math.exp %146 : vector<8x40xf32>
    %cst_33 = arith.constant 1.000000e+00 : f32
    %148 = vector.broadcast %cst_33 : f32 to vector<8x40xf32>
    %149 = arith.addf %148, %147 : vector<8x40xf32>
    %150 = arith.divf %148, %149 : vector<8x40xf32>
    %151 = vector.extract_strided_slice %134 {offsets = [0, 80], sizes = [8, 40], strides = [1, 1]} : vector<8x120xf32> to vector<8x40xf32>
    %152 = vector.extract_strided_slice %133 {offsets = [0, 80], sizes = [8, 40], strides = [1, 1]} : vector<8x120xf32> to vector<8x40xf32>
    %153 = vector.broadcast %7 : vector<1x40xf32> to vector<8x40xf32>
    %154 = arith.addf %152, %153 : vector<8x40xf32>
    %155 = arith.mulf %142, %154 : vector<8x40xf32>
    %156 = arith.addf %151, %155 : vector<8x40xf32>
    %157 = math.tanh %156 : vector<8x40xf32>
    %cst_34 = arith.constant 1.000000e+00 : f32
    %158 = vector.broadcast %cst_34 : f32 to vector<8x40xf32>
    %159 = arith.subf %158, %150 : vector<8x40xf32>
    %160 = arith.mulf %159, %157 : vector<8x40xf32>
    %161 = arith.mulf %150, %131 : vector<8x40xf32>
    %162 = arith.addf %160, %161 : vector<8x40xf32>
    %c32 = arith.constant 32 : index
    %c0_35 = arith.constant 0 : index
    %163 = vector.load %arg13[%c32, %c0_35] : memref<64x40xf32, #tpu.memory_space<vmem>>, vector<8x40xf32>
    tpu.vector_store %arg13[%c32, %c0_35], %162 {strides = array<i32>} : memref<64x40xf32, #tpu.memory_space<vmem>>, vector<8x40xf32>,
    %cst_36 = arith.constant dense<0.000000e+00> : vector<8x120xf32>
    %164 = tpu.matmul %162, %6, %cst_36 {dimension_numbers = #tpu.dot_dimension_numbers<[1], [0], [0], [1], [0, 0, 1, 1], [], []>} : vector<8x40xf32>, vector<40x120xf32>, vector<8x120xf32> -> vector<8x120xf32>
    %165 = vector.extract_strided_slice %5 {offsets = [40, 0], sizes = [8, 120], strides = [1, 1]} : vector<64x120xf32> to vector<8x120xf32>
    %166 = vector.extract_strided_slice %165 {offsets = [0, 0], sizes = [8, 40], strides = [1, 1]} : vector<8x120xf32> to vector<8x40xf32>
    %167 = vector.extract_strided_slice %164 {offsets = [0, 0], sizes = [8, 40], strides = [1, 1]} : vector<8x120xf32> to vector<8x40xf32>
    %168 = arith.addf %166, %167 : vector<8x40xf32>
    %169 = arith.negf %168 : vector<8x40xf32>
    %170 = math.exp %169 : vector<8x40xf32>
    %cst_37 = arith.constant 1.000000e+00 : f32
    %171 = vector.broadcast %cst_37 : f32 to vector<8x40xf32>
    %172 = arith.addf %171, %170 : vector<8x40xf32>
    %173 = arith.divf %171, %172 : vector<8x40xf32>
    %174 = vector.extract_strided_slice %165 {offsets = [0, 40], sizes = [8, 40], strides = [1, 1]} : vector<8x120xf32> to vector<8x40xf32>
    %175 = vector.extract_strided_slice %164 {offsets = [0, 40], sizes = [8, 40], strides = [1, 1]} : vector<8x120xf32> to vector<8x40xf32>
    %176 = arith.addf %174, %175 : vector<8x40xf32>
    %177 = arith.negf %176 : vector<8x40xf32>
    %178 = math.exp %177 : vector<8x40xf32>
    %cst_38 = arith.constant 1.000000e+00 : f32
    %179 = vector.broadcast %cst_38 : f32 to vector<8x40xf32>
    %180 = arith.addf %179, %178 : vector<8x40xf32>
    %181 = arith.divf %179, %180 : vector<8x40xf32>
    %182 = vector.extract_strided_slice %165 {offsets = [0, 80], sizes = [8, 40], strides = [1, 1]} : vector<8x120xf32> to vector<8x40xf32>
    %183 = vector.extract_strided_slice %164 {offsets = [0, 80], sizes = [8, 40], strides = [1, 1]} : vector<8x120xf32> to vector<8x40xf32>
    %184 = vector.broadcast %7 : vector<1x40xf32> to vector<8x40xf32>
    %185 = arith.addf %183, %184 : vector<8x40xf32>
    %186 = arith.mulf %173, %185 : vector<8x40xf32>
    %187 = arith.addf %182, %186 : vector<8x40xf32>
    %188 = math.tanh %187 : vector<8x40xf32>
    %cst_39 = arith.constant 1.000000e+00 : f32
    %189 = vector.broadcast %cst_39 : f32 to vector<8x40xf32>
    %190 = arith.subf %189, %181 : vector<8x40xf32>
    %191 = arith.mulf %190, %188 : vector<8x40xf32>
    %192 = arith.mulf %181, %162 : vector<8x40xf32>
    %193 = arith.addf %191, %192 : vector<8x40xf32>
    %c40 = arith.constant 40 : index
    %c0_40 = arith.constant 0 : index
    %194 = vector.load %arg13[%c40, %c0_40] : memref<64x40xf32, #tpu.memory_space<vmem>>, vector<8x40xf32>
    tpu.vector_store %arg13[%c40, %c0_40], %193 {strides = array<i32>} : memref<64x40xf32, #tpu.memory_space<vmem>>, vector<8x40xf32>,
    %cst_41 = arith.constant dense<0.000000e+00> : vector<8x120xf32>
    %195 = tpu.matmul %193, %6, %cst_41 {dimension_numbers = #tpu.dot_dimension_numbers<[1], [0], [0], [1], [0, 0, 1, 1], [], []>} : vector<8x40xf32>, vector<40x120xf32>, vector<8x120xf32> -> vector<8x120xf32>
    %196 = vector.extract_strided_slice %5 {offsets = [48, 0], sizes = [8, 120], strides = [1, 1]} : vector<64x120xf32> to vector<8x120xf32>
    %197 = vector.extract_strided_slice %196 {offsets = [0, 0], sizes = [8, 40], strides = [1, 1]} : vector<8x120xf32> to vector<8x40xf32>
    %198 = vector.extract_strided_slice %195 {offsets = [0, 0], sizes = [8, 40], strides = [1, 1]} : vector<8x120xf32> to vector<8x40xf32>
    %199 = arith.addf %197, %198 : vector<8x40xf32>
    %200 = arith.negf %199 : vector<8x40xf32>
    %201 = math.exp %200 : vector<8x40xf32>
    %cst_42 = arith.constant 1.000000e+00 : f32
    %202 = vector.broadcast %cst_42 : f32 to vector<8x40xf32>
    %203 = arith.addf %202, %201 : vector<8x40xf32>
    %204 = arith.divf %202, %203 : vector<8x40xf32>
    %205 = vector.extract_strided_slice %196 {offsets = [0, 40], sizes = [8, 40], strides = [1, 1]} : vector<8x120xf32> to vector<8x40xf32>
    %206 = vector.extract_strided_slice %195 {offsets = [0, 40], sizes = [8, 40], strides = [1, 1]} : vector<8x120xf32> to vector<8x40xf32>
    %207 = arith.addf %205, %206 : vector<8x40xf32>
    %208 = arith.negf %207 : vector<8x40xf32>
    %209 = math.exp %208 : vector<8x40xf32>
    %cst_43 = arith.constant 1.000000e+00 : f32
    %210 = vector.broadcast %cst_43 : f32 to vector<8x40xf32>
    %211 = arith.addf %210, %209 : vector<8x40xf32>
    %212 = arith.divf %210, %211 : vector<8x40xf32>
    %213 = vector.extract_strided_slice %196 {offsets = [0, 80], sizes = [8, 40], strides = [1, 1]} : vector<8x120xf32> to vector<8x40xf32>
    %214 = vector.extract_strided_slice %195 {offsets = [0, 80], sizes = [8, 40], strides = [1, 1]} : vector<8x120xf32> to vector<8x40xf32>
    %215 = vector.broadcast %7 : vector<1x40xf32> to vector<8x40xf32>
    %216 = arith.addf %214, %215 : vector<8x40xf32>
    %217 = arith.mulf %204, %216 : vector<8x40xf32>
    %218 = arith.addf %213, %217 : vector<8x40xf32>
    %219 = math.tanh %218 : vector<8x40xf32>
    %cst_44 = arith.constant 1.000000e+00 : f32
    %220 = vector.broadcast %cst_44 : f32 to vector<8x40xf32>
    %221 = arith.subf %220, %212 : vector<8x40xf32>
    %222 = arith.mulf %221, %219 : vector<8x40xf32>
    %223 = arith.mulf %212, %193 : vector<8x40xf32>
    %224 = arith.addf %222, %223 : vector<8x40xf32>
    %c48 = arith.constant 48 : index
    %c0_45 = arith.constant 0 : index
    %225 = vector.load %arg13[%c48, %c0_45] : memref<64x40xf32, #tpu.memory_space<vmem>>, vector<8x40xf32>
    tpu.vector_store %arg13[%c48, %c0_45], %224 {strides = array<i32>} : memref<64x40xf32, #tpu.memory_space<vmem>>, vector<8x40xf32>,
    %cst_46 = arith.constant dense<0.000000e+00> : vector<8x120xf32>
    %226 = tpu.matmul %224, %6, %cst_46 {dimension_numbers = #tpu.dot_dimension_numbers<[1], [0], [0], [1], [0, 0, 1, 1], [], []>} : vector<8x40xf32>, vector<40x120xf32>, vector<8x120xf32> -> vector<8x120xf32>
    %227 = vector.extract_strided_slice %5 {offsets = [56, 0], sizes = [8, 120], strides = [1, 1]} : vector<64x120xf32> to vector<8x120xf32>
    %228 = vector.extract_strided_slice %227 {offsets = [0, 0], sizes = [8, 40], strides = [1, 1]} : vector<8x120xf32> to vector<8x40xf32>
    %229 = vector.extract_strided_slice %226 {offsets = [0, 0], sizes = [8, 40], strides = [1, 1]} : vector<8x120xf32> to vector<8x40xf32>
    %230 = arith.addf %228, %229 : vector<8x40xf32>
    %231 = arith.negf %230 : vector<8x40xf32>
    %232 = math.exp %231 : vector<8x40xf32>
    %cst_47 = arith.constant 1.000000e+00 : f32
    %233 = vector.broadcast %cst_47 : f32 to vector<8x40xf32>
    %234 = arith.addf %233, %232 : vector<8x40xf32>
    %235 = arith.divf %233, %234 : vector<8x40xf32>
    %236 = vector.extract_strided_slice %227 {offsets = [0, 40], sizes = [8, 40], strides = [1, 1]} : vector<8x120xf32> to vector<8x40xf32>
    %237 = vector.extract_strided_slice %226 {offsets = [0, 40], sizes = [8, 40], strides = [1, 1]} : vector<8x120xf32> to vector<8x40xf32>
    %238 = arith.addf %236, %237 : vector<8x40xf32>
    %239 = arith.negf %238 : vector<8x40xf32>
    %240 = math.exp %239 : vector<8x40xf32>
    %cst_48 = arith.constant 1.000000e+00 : f32
    %241 = vector.broadcast %cst_48 : f32 to vector<8x40xf32>
    %242 = arith.addf %241, %240 : vector<8x40xf32>
    %243 = arith.divf %241, %242 : vector<8x40xf32>
    %244 = vector.extract_strided_slice %227 {offsets = [0, 80], sizes = [8, 40], strides = [1, 1]} : vector<8x120xf32> to vector<8x40xf32>
    %245 = vector.extract_strided_slice %226 {offsets = [0, 80], sizes = [8, 40], strides = [1, 1]} : vector<8x120xf32> to vector<8x40xf32>
    %246 = vector.broadcast %7 : vector<1x40xf32> to vector<8x40xf32>
    %247 = arith.addf %245, %246 : vector<8x40xf32>
    %248 = arith.mulf %235, %247 : vector<8x40xf32>
    %249 = arith.addf %244, %248 : vector<8x40xf32>
    %250 = math.tanh %249 : vector<8x40xf32>
    %cst_49 = arith.constant 1.000000e+00 : f32
    %251 = vector.broadcast %cst_49 : f32 to vector<8x40xf32>
    %252 = arith.subf %251, %243 : vector<8x40xf32>
    %253 = arith.mulf %252, %250 : vector<8x40xf32>
    %254 = arith.mulf %243, %224 : vector<8x40xf32>
    %255 = arith.addf %253, %254 : vector<8x40xf32>
    %c56 = arith.constant 56 : index
    %c0_50 = arith.constant 0 : index
    %256 = vector.load %arg13[%c56, %c0_50] : memref<64x40xf32, #tpu.memory_space<vmem>>, vector<8x40xf32>
    tpu.vector_store %arg13[%c56, %c0_50], %255 {strides = array<i32>} : memref<64x40xf32, #tpu.memory_space<vmem>>, vector<8x40xf32>,
    %c0_51 = arith.constant 0 : index
    %c0_52 = arith.constant 0 : index
    %257 = vector.load %arg12[%c0_51, %c0_52] : memref<8x40xf32, #tpu.memory_space<vmem>>, vector<8x40xf32>
    tpu.vector_store %arg12[%c0_51, %c0_52], %255 {strides = array<i32>} : memref<8x40xf32, #tpu.memory_space<vmem>>, vector<8x40xf32>,
    %c0_53 = arith.constant 0 : index
    %c0_54 = arith.constant 0 : index
    %258 = vector.load %arg13[%c0_53, %c0_54] : memref<64x40xf32, #tpu.memory_space<vmem>>, vector<64x40xf32>
    %c0_55 = arith.constant 0 : index
    %c0_56 = arith.constant 0 : index
    %259 = vector.load %arg6[%c0_55, %c0_56] : memref<40x120xf32, #tpu.memory_space<vmem>>, vector<40x120xf32>
    %cst_57 = arith.constant dense<0.000000e+00> : vector<64x120xf32>
    %260 = tpu.matmul %258, %259, %cst_57 {dimension_numbers = #tpu.dot_dimension_numbers<[1], [0], [0], [1], [0, 0, 1, 1], [], []>} : vector<64x40xf32>, vector<40x120xf32>, vector<64x120xf32> -> vector<64x120xf32>
    %c0_58 = arith.constant 0 : index
    %c0_59 = arith.constant 0 : index
    %261 = vector.load %arg7[%c0_58, %c0_59] : memref<1x120xf32, #tpu.memory_space<vmem>>, vector<1x120xf32>
    %262 = vector.broadcast %261 : vector<1x120xf32> to vector<64x120xf32>
    %263 = arith.addf %260, %262 : vector<64x120xf32>
    %264 = vector.extract_strided_slice %263 {offsets = [0, 0], sizes = [64, 40], strides = [1, 1]} : vector<64x120xf32> to vector<64x40xf32>
    %265 = vector.extract_strided_slice %263 {offsets = [0, 40], sizes = [64, 40], strides = [1, 1]} : vector<64x120xf32> to vector<64x40xf32>
    %266 = vector.extract_strided_slice %263 {offsets = [0, 80], sizes = [64, 40], strides = [1, 1]} : vector<64x120xf32> to vector<64x40xf32>
    %cst_60 = arith.constant dense<0.000000e+00> : vector<64x64xf32>
    %267 = tpu.matmul %264, %265, %cst_60 {dimension_numbers = #tpu.dot_dimension_numbers<[1], [1], [0], [0], [0, 0, 1, 0], [], []>} : vector<64x40xf32>, vector<64x40xf32>, vector<64x64xf32> -> vector<64x64xf32>
    %268 = tpu.iota {dimensions = array<i32: 0>} : vector<64x64xi32>
    %269 = tpu.iota {dimensions = array<i32: 1>} : vector<64x64xi32>
    %c8_i32 = arith.constant 8 : i32
    %c0_i32 = arith.constant 0 : i32
    %270 = arith.cmpi eq, %c8_i32, %c0_i32 : i32
    %c1_i32 = arith.constant 1 : i32
    %271 = arith.select %270, %c1_i32, %c8_i32 : i32
    %272 = vector.broadcast %271 : i32 to vector<64x64xi32>
    %273 = arith.remsi %268, %272 : vector<64x64xi32>
    %c0_i32_61 = arith.constant 0 : i32
    %274 = vector.broadcast %c0_i32_61 : i32 to vector<64x64xi32>
    %275 = arith.cmpi ne, %273, %274 : vector<64x64xi32>
    %c0_i32_62 = arith.constant 0 : i32
    %276 = vector.broadcast %c0_i32_62 : i32 to vector<64x64xi32>
    %277 = arith.cmpi slt, %273, %276 : vector<64x64xi32>
    %c0_i32_63 = arith.constant 0 : i32
    %278 = arith.cmpi slt, %271, %c0_i32_63 : i32
    %279 = vector.broadcast %278 : i1 to vector<64x64xi1>
    %280 = vector.broadcast %279 : vector<64x64xi1> to vector<64x64xi1>
    %281 = arith.xori %277, %280 : vector<64x64xi1>
    %282 = arith.andi %281, %275 : vector<64x64xi1>
    %283 = vector.broadcast %271 : i32 to vector<64x64xi32>
    %284 = arith.addi %273, %283 : vector<64x64xi32>
    %285 = arith.select %282, %284, %273 : vector<64x64xi1>, vector<64x64xi32>
    %c8_i32_64 = arith.constant 8 : i32
    %c0_i32_65 = arith.constant 0 : i32
    %286 = arith.cmpi eq, %c8_i32_64, %c0_i32_65 : i32
    %c1_i32_66 = arith.constant 1 : i32
    %287 = arith.select %286, %c1_i32_66, %c8_i32_64 : i32
    %288 = vector.broadcast %287 : i32 to vector<64x64xi32>
    %289 = arith.remsi %269, %288 : vector<64x64xi32>
    %c0_i32_67 = arith.constant 0 : i32
    %290 = vector.broadcast %c0_i32_67 : i32 to vector<64x64xi32>
    %291 = arith.cmpi ne, %289, %290 : vector<64x64xi32>
    %c0_i32_68 = arith.constant 0 : i32
    %292 = vector.broadcast %c0_i32_68 : i32 to vector<64x64xi32>
    %293 = arith.cmpi slt, %289, %292 : vector<64x64xi32>
    %c0_i32_69 = arith.constant 0 : i32
    %294 = arith.cmpi slt, %287, %c0_i32_69 : i32
    %295 = vector.broadcast %294 : i1 to vector<64x64xi1>
    %296 = vector.broadcast %295 : vector<64x64xi1> to vector<64x64xi1>
    %297 = arith.xori %293, %296 : vector<64x64xi1>
    %298 = arith.andi %297, %291 : vector<64x64xi1>
    %299 = vector.broadcast %287 : i32 to vector<64x64xi32>
    %300 = arith.addi %289, %299 : vector<64x64xi32>
    %301 = arith.select %298, %300, %289 : vector<64x64xi1>, vector<64x64xi32>
    %302 = arith.cmpi eq, %285, %301 : vector<64x64xi32>
    %cst_70 = arith.constant -1.000000e+30 : f32
    %303 = vector.broadcast %cst_70 : f32 to vector<64x64xf32>
    %304 = arith.select %302, %267, %303 : vector<64x64xi1>, vector<64x64xf32>
    %cst_71 = arith.constant dense<0xFF800000> : vector<64xf32>
    %305 = vector.multi_reduction <maximumf>, %304, %cst_71 [1] : vector<64x64xf32> to vector<64xf32>
    %306 = vector.shape_cast %305 : vector<64xf32> to vector<64x1xf32>
    %307 = vector.broadcast %306 : vector<64x1xf32> to vector<64x64xf32>
    %308 = arith.subf %304, %307 : vector<64x64xf32>
    %309 = math.exp %308 : vector<64x64xf32>
    %cst_72 = arith.constant dense<0.000000e+00> : vector<64xf32>
    %310 = vector.multi_reduction <add>, %309, %cst_72 [1] : vector<64x64xf32> to vector<64xf32>
    %311 = vector.shape_cast %310 : vector<64xf32> to vector<64x1xf32>
    %312 = tpu.reciprocal %311 {approx = true} : vector<64x1xf32> -> vector<64x1xf32>
    %313 = arith.mulf %311, %312 : vector<64x1xf32>
    %cst_73 = arith.constant 2.000000e+00 : f32
    %314 = vector.broadcast %cst_73 : f32 to vector<64x1xf32>
    %315 = arith.subf %314, %313 : vector<64x1xf32>
    %316 = arith.mulf %312, %315 : vector<64x1xf32>
    %317 = vector.broadcast %316 : vector<64x1xf32> to vector<64x64xf32>
    %318 = arith.mulf %309, %317 : vector<64x64xf32>
    %cst_74 = arith.constant dense<0.000000e+00> : vector<64x40xf32>
    %319 = tpu.matmul %318, %266, %cst_74 {dimension_numbers = #tpu.dot_dimension_numbers<[1], [0], [0], [1], [0, 0, 1, 1], [], []>} : vector<64x64xf32>, vector<64x40xf32>, vector<64x40xf32> -> vector<64x40xf32>
    %320 = tpu.iota {dimensions = array<i32: 0>} : vector<8x64xi32>
    %321 = tpu.iota {dimensions = array<i32: 1>} : vector<8x64xi32>
    %c8_i32_75 = arith.constant 8 : i32
    %c0_i32_76 = arith.constant 0 : i32
    %322 = arith.cmpi eq, %c8_i32_75, %c0_i32_76 : i32
    %c1_i32_77 = arith.constant 1 : i32
    %323 = arith.select %322, %c1_i32_77, %c8_i32_75 : i32
    %324 = vector.broadcast %323 : i32 to vector<8x64xi32>
    %325 = arith.remsi %321, %324 : vector<8x64xi32>
    %c0_i32_78 = arith.constant 0 : i32
    %326 = vector.broadcast %c0_i32_78 : i32 to vector<8x64xi32>
    %327 = arith.cmpi ne, %325, %326 : vector<8x64xi32>
    %c0_i32_79 = arith.constant 0 : i32
    %328 = vector.broadcast %c0_i32_79 : i32 to vector<8x64xi32>
    %329 = arith.cmpi slt, %325, %328 : vector<8x64xi32>
    %c0_i32_80 = arith.constant 0 : i32
    %330 = arith.cmpi slt, %323, %c0_i32_80 : i32
    %331 = vector.broadcast %330 : i1 to vector<8x64xi1>
    %332 = vector.broadcast %331 : vector<8x64xi1> to vector<8x64xi1>
    %333 = arith.xori %329, %332 : vector<8x64xi1>
    %334 = arith.andi %333, %327 : vector<8x64xi1>
    %335 = vector.broadcast %323 : i32 to vector<8x64xi32>
    %336 = arith.addi %325, %335 : vector<8x64xi32>
    %337 = arith.select %334, %336, %325 : vector<8x64xi1>, vector<8x64xi32>
    %338 = arith.cmpi eq, %337, %320 : vector<8x64xi32>
    %339 = arith.extui %338 : vector<8x64xi1> to vector<8x64xi32>
    %340 = arith.sitofp %339 : vector<8x64xi32> to vector<8x64xf32>
    %cst_81 = arith.constant dense<0.000000e+00> : vector<8x40xf32>
    %341 = tpu.matmul %340, %319, %cst_81 {dimension_numbers = #tpu.dot_dimension_numbers<[1], [0], [0], [1], [0, 0, 1, 1], [], []>} : vector<8x64xf32>, vector<64x40xf32>, vector<8x40xf32> -> vector<8x40xf32>
    %c0_82 = arith.constant 0 : index
    %c0_83 = arith.constant 0 : index
    %342 = vector.load %arg8[%c0_82, %c0_83] : memref<40x50xf32, #tpu.memory_space<vmem>>, vector<40x50xf32>
    %cst_84 = arith.constant dense<0.000000e+00> : vector<8x50xf32>
    %343 = tpu.matmul %341, %342, %cst_84 {dimension_numbers = #tpu.dot_dimension_numbers<[1], [0], [0], [1], [0, 0, 1, 1], [], []>} : vector<8x40xf32>, vector<40x50xf32>, vector<8x50xf32> -> vector<8x50xf32>
    %c0_85 = arith.constant 0 : index
    %c0_86 = arith.constant 0 : index
    %344 = vector.load %arg1[%c0_85, %c0_86] : memref<8x3xf32, #tpu.memory_space<vmem>>, vector<8x3xf32>
    %c0_87 = arith.constant 0 : index
    %c0_88 = arith.constant 0 : index
    %345 = vector.load %arg9[%c0_87, %c0_88] : memref<3x50xf32, #tpu.memory_space<vmem>>, vector<3x50xf32>
    %cst_89 = arith.constant dense<0.000000e+00> : vector<8x50xf32>
    %346 = tpu.matmul %344, %345, %cst_89 {dimension_numbers = #tpu.dot_dimension_numbers<[1], [0], [0], [1], [0, 0, 1, 1], [], []>} : vector<8x3xf32>, vector<3x50xf32>, vector<8x50xf32> -> vector<8x50xf32>
    %347 = arith.addf %343, %346 : vector<8x50xf32>
    %c0_90 = arith.constant 0 : index
    %c0_91 = arith.constant 0 : index
    %348 = vector.load %arg10[%c0_90, %c0_91] : memref<1x50xf32, #tpu.memory_space<vmem>>, vector<1x50xf32>
    %349 = vector.broadcast %348 : vector<1x50xf32> to vector<8x50xf32>
    %350 = arith.addf %347, %349 : vector<8x50xf32>
    %351 = math.tanh %350 : vector<8x50xf32>
    %c0_92 = arith.constant 0 : index
    %c0_93 = arith.constant 0 : index
    %352 = vector.load %arg11[%c0_92, %c0_93] : memref<8x50xf32, #tpu.memory_space<vmem>>, vector<8x50xf32>
    tpu.vector_store %arg11[%c0_92, %c0_93], %351 {strides = array<i32>} : memref<8x50xf32, #tpu.memory_space<vmem>>, vector<8x50xf32>,
    return
  }
}

</mosaic_0001>

<bundles_post_ra>
// kernel: tpu_custom_call.1
= control target key start
LH: loop header
LB: loop body
LE: loop exit
PB: predicated region body
PF: predicated region fallthrough
CT: control target
= control target key end

     0   :  { %18 = vsyncpa [#allocation4], 0  ;;  %s3305_s0 = inlined_call_operand.vmem [shape: f32[64,5], index: 0, kind: input, shape index: {}]   ;;  %s3306_s1 = inlined_call_operand.vmem [shape: f32[8,3], index: 1, kind: input, shape index: {}]   ;;  %s3307_s2 = inlined_call_operand.vmem [shape: f32[5,120], index: 2, kind: input, shape index: {}]   ;;  %s3308_s3 = inlined_call_operand.vmem [shape: f32[40,120], index: 3, kind: input, shape index: {}]   ;;  %s3309_s4 = inlined_call_operand.vmem [shape: f32[1,120], index: 4, kind: input, shape index: {}]   ;;  %s3310_s5 = inlined_call_operand.vmem [shape: f32[1,40], index: 5, kind: input, shape index: {}]   ;;  %s3311_s6 = inlined_call_operand.vmem [shape: f32[40,120], index: 6, kind: input, shape index: {}]   ;;  %s3312_s7 = inlined_call_operand.vmem [shape: f32[1,120], index: 7, kind: input, shape index: {}]   ;;  %s3313_s8 = inlined_call_operand.hbm [shape: f32[40,50], index: 8, kind: input, shape index: {}]   ;;  %s3314_s9 = inlined_call_operand.vmem [shape: f32[3,50], index: 9, kind: input, shape index: {}]   ;;  %s3315_s10 = inlined_call_operand.vmem [shape: f32[1,50], index: 10, kind: input, shape index: {}]   ;;  %s3316_s11 = inlined_call_operand.hbm [shape: f32[8,50], index: 11, kind: output, shape index: {0}]   ;;  %s3317_s12 = inlined_call_operand.hbm [shape: f32[8,40], index: 12, kind: output, shape index: {1}]  }
   0x1   :  { %19 = vsyncpa [#allocation5], 0 }
   0x2   :  { %20 = vsyncpa [#allocation8], 0  ;;  %s2778_s21 = smov [#allocation3]   ;;  %s2706_s25 = scalar_lea.hbm %s3313_s8, 640 }
   0x3   :  { %s42_s22 = sshll.u32 %s2778_s21, 4  ;;  %p2707_p0 = scmp.ne.s32.totalorder %s3313_s8, %s2706_s25  ;;  %s43_s22 = int_to_ptr.vmem [resolvable:$true] %s42_s22 }
   0x4   :  { %p2710_p1 = scmp.lt.u32.totalorder %s2706_s25, %s3313_s8 }
   0x6   :  { %p2712_p2 = pnand %p2710_p1, %p2707_p0 }
   0x8   :  { %2715 = shalt.err (!%p2712_p2)
}
   0x9   :  { %s2716_s30 = scalar_lea.vmem %s43_s22, 640  ;;  %p2721_p4 = scmp.lt.s32.totalorder %s43_s22, %s43_s22 }
   0xa   :  { %p2717_p3 = scmp.ne.s32.totalorder %s43_s22, %s2716_s30  ;;  %p2722_p5 = scmp.lt.s32.totalorder %s2716_s30, %s2716_s30 }
   0xc   :  { %p2723_p6 = por %p2722_p5, %p2721_p4 }
   0xe   :  { %p2724_p7 = pnand %p2723_p6, %p2717_p3 }
  0x10   :  { %2727 = shalt.err (!%p2724_p7)
}
  0x11   :  { %s2779_s13 = smov 128   ;;  %s2780_s14 = smov 8  }
  0x12   :  { %48 = dma.hbm_to_vmem [thread:$0]  %s3313_s8, 640, %s43_s22, [#allocation4], %s2779_s13, %s2779_s13, %s2780_s14  }
  0x13   :  { %2772 = dma.done.wait [#allocation4], 640  }
  0x14   :  { %2773 = vsyncadd [#allocation4], 4294966656  ;;  %vm97_vm0 = vcmask 1044480   ;;  %vm72_vm1 = vcmask 39936   ;;  %v64_v0 = vld [vmem:[%s3307_s2] sm:$0x1f] }
  0x15   :  { %v62_v1 = vld [vmem:[%s3305_s0 + $0x30] sm:$0xff]  ;;  %v63_v2 = vld [vmem:[%s3305_s0 + $0x38] sm:$0xff]  ;;  %2571 = vmatprep.subr.msk.mxu1 %vm97_vm0, %v64_v0  ;;  %v206_v3 = vld [vmem:[%s3308_s3] sm:$0xff]  ;;  %2224 = vmatprep.subr.msk.mxu0 %vm97_vm0, %v64_v0  ;;  %v2781_v9 = vmov 0.0|0.0   ;;  %vm2782_vm2 = vmmov 0   ;;  %v2783_v13 = vmov 0.0  }
  0x16   :  { %2235 = vmatprep.mubr.msk.f32.mxu1 %vm72_vm1, %v62_v1  ;;  %v207_v4 = vld [vmem:[%s3308_s3 + $0x8] sm:$0xff]  ;;  %v208_v5 = vld [vmem:[%s3308_s3 + $0x10] sm:$0xff]  ;;  %2572 = vmatpush3.msk.msra.mxu1 %vm97_vm0, %v64_v0  ;;  %v209_v7 = vld [vmem:[%s3308_s3 + $0x18] sm:$0xff]  ;;  %s2784_s17 = smov 80   ;;  %s2786_s26 = smov 88   ;;  %vm212_vm3 = vcmask 326656  }
  0x17   :  { %v2887_v6 = vpack.c.bf16 %v207_v4, %v206_v3  ;;  %v56_v8 = vld [vmem:[%s3305_s0] sm:$0xff]  ;;  %2236 = vmatmul.mubr.msk.f32.vlgmr.msra.gmra.mrb[0].mxu1 %vm72_vm1, %v63_v2  ;;  %2457 = vmatprep.subr.bf16.mxu1 %v2781_v9  ;;  %v57_v10 = vld [vmem:[%s3305_s0 + $0x8] sm:$0xff]  ;;  %v2902_v11 = vpack.c.bf16 %v209_v7, %v208_v5  ;;  %v58_v34 = vld [vmem:[%s3305_s0 + $0x10] sm:$0xff]  ;;  %vm1500_vm7 = vcmask 523264   ;;  %vm1853_vm15 = vcmask 1042432  }
  0x18   :  { %2225 = vmatpush3.msk.msra.mxu0 %vm97_vm0, %v64_v0  ;;  %v2051_v12 = vld [vmem:[%s3310_s5] ss:$0 sm:$0xff]  ;;  %2226 = vmatprep.mubr.msk.f32.mxu0 %vm72_vm1, %v56_v8  ;;  %v59_v35 = vld [vmem:[%s3305_s0 + $0x18] sm:$0xff]  ;;  %v61_v37 = vld [vmem:[%s3305_s0 + $0x28] sm:$0xff]  ;;  %vm1849_vm0 = vcmask 23552  }
  0x19   :  { %2459 = vmatpush3.bf16.msra.mxu1 %v2887_v6  ;;  %2227 = vmatmul.mubr.msk.f32.vlgmr.msra.gmra.mrb[0].mxu0 %vm72_vm1, %v57_v10  ;;  %v2921_v14 = vld [vmem:[%s3308_s3 + $0x20] sm:$0xff]  ;;  %s2785_s3 = smov 48   ;;  %vm3129_vm4 = vmpackc.low %vm212_vm3, %vm212_vm3 }
  0x1a   :  { %2460 = vmatprep.subr.bf16.mxu1 %v2781_v9  ;;  %2248 = vmatprep.mubr.msk.f32.mxu1 %vm2782_vm2, %v2783_v13  ;;  %v2950_v23 = vld [vmem:[%s3309_s4] ss:$0 sm:$0xff] }
  0x1b   :  { %298 = vrot.lane.b32.xlu0 %v2051_v12, %s2784_s17  ;;  %2463 = vmatprep.subr.bf16.mxu0 %v2781_v9  ;;  %v60_v36 = vld [vmem:[%s3305_s0 + $0x20] sm:$0xff] }
  0x1c   :  { %2465 = vmatpush3.bf16.msra.mxu0 %v2887_v6  ;;  %2229 = vmatprep.mubr.msk.f32.mxu0 %vm72_vm1, %v58_v34 }
  0x1d   :  { %2462 = vmatpush3.bf16.msra.mxu1 %v2902_v11  ;;  %2466 = vmatprep.subr.bf16.mxu0 %v2781_v9 }
  0x1e   :  { %2246 = vmatprep.subr.mxu1 %v2783_v13  ;;  %2230 = vmatmul.mubr.msk.f32.gmra.mrb[2].mxu0 %vm72_vm1, %v59_v35 }
  0x1f   :  { %2232 = vmatprep.mubr.msk.f32.mxu0 %vm72_vm1, %v60_v36 }
  0x20   :  { %2468 = vmatpush3.bf16.msra.mxu0 %v2902_v11 }
  0x21   :  { %2247 = vmatpush3.msra.mxu1 %v2921_v14  ;;  %2259 = vmatprep.subr.mxu0 %v2783_v13 }
  0x22   :  { %2249 = vmatmul.mubr.f32.vlgmr.msra.gmra.mrb[2].mxu1 %v2783_v13  ;;  %2469 = vmatprep.subr.bf16.mxu1 %v2781_v9 }
  0x23   :  { %2274 = vmatprep.mubr.msk.f32.mxu1 %vm2782_vm2, %v2783_v13  ;;  %2471 = vmatpush3.bf16.msra.mxu1 %v2887_v6 }
  0x24   :  { %2260 = vmatpush3.msra.mxu0 %v2921_v14  ;;  %2472 = vmatprep.subr.bf16.mxu1 %v2781_v9 }
  0x25   :  { %2475 = vmatprep.subr.bf16.mxu0 %v2781_v9  ;;  %2233 = vmatmul.mubr.msk.f32.gmra.mrb[4].mxu0 %vm72_vm1, %v61_v37 }
  0x26   :  { %2261 = vmatprep.mubr.msk.f32.mxu0 %vm2782_vm2, %v2783_v13 }
  0x27   :  { %2474 = vmatpush3.bf16.msra.mxu1 %v2902_v11 }
  0x28   :  { %2272 = vmatprep.subr.mxu1 %v2783_v13 }
  0x2b   :  { %2273 = vmatpush3.msra.mxu1 %v2921_v14 }
  0x2c   :  { %2481 = vmatprep.subr.bf16.mxu1 %v2781_v9 }
  0x8d   :  { %v2943_v19 = vpop.permute.xlu0 %298 }
  0xea   :  { %v2939_v15 = vpop.f32.mrb[0].mxu1 }
  0xeb   :  { %v2941_v16 = vpop.f32.mrb[1].mxu1 }
  0xec   :  { %v2228_v17 = vpop.f32.mrb[0].mxu0 }
  0xed   :  { %v167_v18 = vpop.f32.mrb[1].mxu0  ;;  %v173_v52 = vadd.f32 %v2228_v17, %v2950_v23 }
  0xee   :  { %v168_v24 = vadd.f32 %v2950_v23, %v167_v18 }
  0xf1   :  { %v2974_v44 = vpop.f32.mrb[2].mxu0 }
  0xf2   :  { %v177_v45 = vpop.f32.mrb[3].mxu0  ;;  %v183_v37 = vadd.f32 %v2974_v44, %v2950_v23 }
  0xf3   :  { %v178_v10 = vadd.f32 %v2950_v23, %v177_v45 }
  0xf5   :  { %v282_v20 = vpop.f32.mrb[2].mxu1 }
  0xf6   :  { %v301_v21 = vadd.f32 %v2943_v19, %v282_v20  ;;  %v2250_v22 = vpop.f32.mrb[3].mxu1  ;;  %v286_v25 = vadd.f32 %v282_v20, %v168_v24 }
  0xf8   :  { %303 = vrot.lane.b32.xlu0 %v301_v21, %s2785_s3  ;;  %v2050_v26 = vmul.f32 -1.442695, %v286_v25  ;;  %v2976_v46 = vpop.f32.mrb[4].mxu0 }
  0xf9   :  { %v2978_v47 = vpop.f32.mrb[5].mxu0 }
  0xfa   :  { %2624 = vpow2.f32 %v2050_v26 }
 0x104   :  { %v2625_v27 = vpop.eup %2624 }
 0x105   :  { %v290_v28 = vadd.f32 1.0, %v2625_v27 }
 0x107   :  { %2626 = vrcp.f32 %v290_v28 }
 0x111   :  { %v2627_v29 = vpop.eup %2626 }
 0x112   :  { %v313_v39 = vsub.f32 1.0, %v2627_v29  ;;  %v319_v41 = vmul.f32 0.0, %v2627_v29 }
 0x16a   :  { %v304_v30 = vpop.permute.xlu0 %303 }
 0x16b   :  { %v306_v31 = vmul.f32 %v2627_v29, %v304_v30 }
 0x16d   :  { %308 = vrot.lane.b32.xlu1 %v306_v31, %s2784_s17 }
 0x1df   :  { %v309_v32 = vpop.permute.xlu1 %308 }
 0x1e0   :  { %v311_v33 = vadd.f32 %v309_v32, %v168_v24 }
 0x1e2   :  { %2628 = vtanh.f32 %v311_v33 }
 0x1ec   :  { %v2629_v38 = vpop.eup %2628 }
 0x1ed   :  { %315 = vrot.lane.b32.xlu1 %v2629_v38, %s2786_s26 }
 0x25f   :  { %v316_v40 = vpop.permute.xlu1 %315 }
 0x260   :  { %v318_v42 = vmul.f32 %v316_v40, %v313_v39 }
 0x262   :  { %v320_v43 = vadd.f32 %v319_v41, %v318_v42 }
 0x264   :  { %322 = vrot.lane.b32.xlu0 %v320_v43, %s2786_s26 }
 0x2d6   :  { %v323_v48 = vpop.permute.xlu0 %322 }
 0x2d7   :  { %325 = vst.msk [vmem:[#allocation2] sm:$0xff] %vm212_vm3, %v323_v48  ;;  %2262 = vmatmul.mubr.msk.f32.vlgmr.msra.gmra.mrb[6].mxu0 %vm212_vm3, %v323_v48 }
 0x2d8   :  { %2477 = vmatpush3.bf16.msra.mxu0 %v2887_v6  ;;  %2287 = vmatprep.mubr.msk.f32.mxu0 %vm2782_vm2, %v2783_v13 }
 0x2d9   :  { %2478 = vmatprep.subr.bf16.mxu0 %v2781_v9 }
 0x2dc   :  { %2480 = vmatpush3.bf16.msra.mxu0 %v2902_v11 }
 0x2dd   :  { %2285 = vmatprep.subr.mxu0 %v2783_v13 }
 0x2e0   :  { %2286 = vmatpush3.msra.mxu0 %v2921_v14 }
 0x2e1   :  { %2487 = vmatprep.subr.bf16.mxu0 %v2781_v9 }
 0x3aa   :  { %v394_v49 = vpop.f32.mrb[6].mxu0 }
 0x3ab   :  { %v405_v50 = vadd.f32 %v394_v49, %v2943_v19  ;;  %v2263_v51 = vpop.f32.mrb[7].mxu0  ;;  %v398_v53 = vadd.f32 %v394_v49, %v173_v52 }
 0x3ad   :  { %407 = vrot.lane.b32.xlu1 %v405_v50, %s2785_s3  ;;  %v2053_v54 = vmul.f32 -1.442695, %v398_v53 }
 0x3af   :  { %2630 = vpow2.f32 %v2053_v54 }
 0x3b9   :  { %v2631_v55 = vpop.eup %2630 }
 0x3ba   :  { %v402_v56 = vadd.f32 1.0, %v2631_v55 }
 0x3bc   :  { %2632 = vrcp.f32 %v402_v56 }
 0x3c6   :  { %v2633_v57 = vpop.eup %2632 }
 0x3c7   :  { %v417_v63 = vsub.f32 1.0, %v2633_v57  ;;  %v423_v1 = vmul.f32 %v2633_v57, %v320_v43 }
 0x41f   :  { %v408_v58 = vpop.permute.xlu1 %407 }
 0x420   :  { %v410_v59 = vmul.f32 %v2633_v57, %v408_v58 }
 0x422   :  { %412 = vrot.lane.b32.xlu0 %v410_v59, %s2784_s17  ;;  %v188_v59 = vadd.f32 %v2950_v23, %v2978_v47 }
 0x494   :  { %v413_v60 = vpop.permute.xlu0 %412 }
 0x495   :  { %v415_v61 = vadd.f32 %v413_v60, %v173_v52 }
 0x497   :  { %2634 = vtanh.f32 %v415_v61 }
 0x4a1   :  { %v2635_v62 = vpop.eup %2634 }
 0x4a2   :  { %419 = vrot.lane.b32.xlu1 %v2635_v62, %s2786_s26 }
 0x514   :  { %v420_v0 = vpop.permute.xlu1 %419 }
 0x515   :  { %v422_v2 = vmul.f32 %v420_v0, %v417_v63 }
 0x517   :  { %v424_v3 = vadd.f32 %v423_v1, %v422_v2 }
 0x519   :  { %426 = vrot.lane.b32.xlu0 %v424_v3, %s2786_s26 }
 0x58b   :  { %v427_v4 = vpop.permute.xlu0 %426 }
 0x58c   :  { %429 = vst.msk [vmem:[#allocation2 + $0x8] sm:$0xff] %vm212_vm3, %v427_v4  ;;  %2275 = vmatmul.mubr.msk.f32.vlgmr.msra.gmra.mrb[4].mxu1 %vm212_vm3, %v427_v4 }
 0x58d   :  { %2483 = vmatpush3.bf16.msra.mxu1 %v2887_v6  ;;  %2300 = vmatprep.mubr.msk.f32.mxu1 %vm2782_vm2, %v2783_v13 }
 0x58e   :  { %2484 = vmatprep.subr.bf16.mxu1 %v2781_v9 }
 0x591   :  { %2486 = vmatpush3.bf16.msra.mxu1 %v2902_v11 }
 0x592   :  { %2298 = vmatprep.subr.mxu1 %v2783_v13 }
 0x595   :  { %2299 = vmatpush3.msra.mxu1 %v2921_v14 }
 0x596   :  { %2493 = vmatprep.subr.bf16.mxu1 %v2781_v9 }
 0x65f   :  { %v498_v5 = vpop.f32.mrb[4].mxu1 }
 0x660   :  { %v509_v7 = vadd.f32 %v498_v5, %v2943_v19  ;;  %v2276_v8 = vpop.f32.mrb[5].mxu1  ;;  %v502_v12 = vadd.f32 %v498_v5, %v178_v10 }
 0x662   :  { %511 = vrot.lane.b32.xlu1 %v509_v7, %s2785_s3  ;;  %v2055_v17 = vmul.f32 -1.442695, %v502_v12 }
 0x664   :  { %2636 = vpow2.f32 %v2055_v17 }
 0x66e   :  { %v2637_v18 = vpop.eup %2636 }
 0x66f   :  { %v506_v20 = vadd.f32 1.0, %v2637_v18 }
 0x671   :  { %2638 = vrcp.f32 %v506_v20 }
 0x67b   :  { %v2639_v21 = vpop.eup %2638 }
 0x67c   :  { %v521_v28 = vsub.f32 1.0, %v2639_v21  ;;  %v527_v30 = vmul.f32 %v2639_v21, %v424_v3 }
 0x6d4   :  { %v512_v22 = vpop.permute.xlu1 %511 }
 0x6d5   :  { %v514_v24 = vmul.f32 %v2639_v21, %v512_v22 }
 0x6d7   :  { %516 = vrot.lane.b32.xlu0 %v514_v24, %s2784_s17 }
 0x749   :  { %v517_v25 = vpop.permute.xlu0 %516 }
 0x74a   :  { %v519_v26 = vadd.f32 %v517_v25, %v178_v10 }
 0x74c   :  { %2640 = vtanh.f32 %v519_v26 }
 0x756   :  { %v2641_v27 = vpop.eup %2640 }
 0x757   :  { %523 = vrot.lane.b32.xlu1 %v2641_v27, %s2786_s26 }
 0x7c9   :  { %v524_v29 = vpop.permute.xlu1 %523 }
 0x7ca   :  { %v526_v31 = vmul.f32 %v524_v29, %v521_v28 }
 0x7cc   :  { %v528_v32 = vadd.f32 %v527_v30, %v526_v31  ;;  %v1063_v30 = vld [vmem:[%s3311_s6] sm:$0xff] }
 0x7ce   :  { %530 = vrot.lane.b32.xlu0 %v528_v32, %s2786_s26 }
 0x840   :  { %v531_v33 = vpop.permute.xlu0 %530 }
 0x841   :  { %533 = vst.msk [vmem:[#allocation2 + $0x10] sm:$0xff] %vm212_vm3, %v531_v33  ;;  %2288 = vmatmul.mubr.msk.f32.vlgmr.msra.gmra.mrb[8].mxu0 %vm212_vm3, %v531_v33 }
 0x842   :  { %2489 = vmatpush3.bf16.msra.mxu0 %v2887_v6  ;;  %2313 = vmatprep.mubr.msk.f32.mxu0 %vm2782_vm2, %v2783_v13 }
 0x843   :  { %2490 = vmatprep.subr.bf16.mxu0 %v2781_v9 }
 0x846   :  { %2492 = vmatpush3.bf16.msra.mxu0 %v2902_v11 }
 0x847   :  { %2311 = vmatprep.subr.mxu0 %v2783_v13 }
 0x84a   :  { %2312 = vmatpush3.msra.mxu0 %v2921_v14 }
 0x84b   :  { %2499 = vmatprep.subr.bf16.mxu0 %v2781_v9 }
 0x914   :  { %v602_v34 = vpop.f32.mrb[8].mxu0 }
 0x915   :  { %v613_v35 = vadd.f32 %v602_v34, %v2943_v19  ;;  %v2289_v36 = vpop.f32.mrb[9].mxu0  ;;  %v606_v38 = vadd.f32 %v602_v34, %v183_v37 }
 0x917   :  { %615 = vrot.lane.b32.xlu1 %v613_v35, %s2785_s3  ;;  %v2057_v39 = vmul.f32 -1.442695, %v606_v38  ;;  %v1065_v38 = vld [vmem:[%s3311_s6 + $0x10] sm:$0xff] }
 0x919   :  { %2642 = vpow2.f32 %v2057_v39  ;;  %v1066_v39 = vld [vmem:[%s3311_s6 + $0x18] sm:$0xff] }
 0x923   :  { %v2643_v40 = vpop.eup %2642 }
 0x924   :  { %v610_v41 = vadd.f32 1.0, %v2643_v40  ;;  %v2509_v40 = vpack.c.bf16 %v1066_v39, %v1065_v38 }
 0x926   :  { %2644 = vrcp.f32 %v610_v41 }
 0x930   :  { %v2645_v42 = vpop.eup %2644 }
 0x931   :  { %v625_v51 = vsub.f32 1.0, %v2645_v42  ;;  %v631_v44 = vmul.f32 %v2645_v42, %v528_v32 }
 0x989   :  { %v616_v43 = vpop.permute.xlu1 %615 }
 0x98a   :  { %v618_v45 = vmul.f32 %v2645_v42, %v616_v43  ;;  %v1055_v42 = vld [vmem:[#allocation2] sm:$0xff] }
 0x98b   :  { %v1067_v43 = vld [vmem:[%s3311_s6 + $0x20] sm:$0xff] }
 0x98c   :  { %620 = vrot.lane.b32.xlu0 %v618_v45, %s2784_s17  ;;  %v1056_v45 = vld [vmem:[#allocation2 + $0x8] sm:$0xff] }
 0x9fe   :  { %v621_v48 = vpop.permute.xlu0 %620 }
 0x9ff   :  { %v623_v49 = vadd.f32 %v621_v48, %v183_v37  ;;  %v1057_v48 = vld [vmem:[#allocation2 + $0x10] sm:$0xff] }
 0xa01   :  { %2646 = vtanh.f32 %v623_v49 }
 0xa0b   :  { %v2647_v50 = vpop.eup %2646 }
 0xa0c   :  { %627 = vrot.lane.b32.xlu1 %v2647_v50, %s2786_s26 }
 0xa7e   :  { %v628_v52 = vpop.permute.xlu1 %627 }
 0xa7f   :  { %v630_v53 = vmul.f32 %v628_v52, %v625_v51 }
 0xa81   :  { %v632_v54 = vadd.f32 %v631_v44, %v630_v53 }
 0xa83   :  { %634 = vrot.lane.b32.xlu0 %v632_v54, %s2786_s26 }
 0xaf5   :  { %v635_v55 = vpop.permute.xlu0 %634 }
 0xaf6   :  { %637 = vst.msk [vmem:[#allocation2 + $0x18] sm:$0xff] %vm212_vm3, %v635_v55  ;;  %2301 = vmatmul.mubr.msk.f32.vlgmr.msra.gmra.mrb[6].mxu1 %vm212_vm3, %v635_v55 }
 0xaf7   :  { %2495 = vmatpush3.bf16.msra.mxu1 %v2887_v6  ;;  %2326 = vmatprep.mubr.msk.f32.mxu1 %vm2782_vm2, %v2783_v13 }
 0xaf8   :  { %2496 = vmatprep.subr.bf16.mxu1 %v2781_v9 }
 0xafb   :  { %2498 = vmatpush3.bf16.msra.mxu1 %v2902_v11 }
 0xafc   :  { %2324 = vmatprep.subr.mxu1 %v2783_v13 }
 0xafd   :  { %v1058_v49 = vld [vmem:[#allocation2 + $0x18] sm:$0xff] }
 0xaff   :  { %2325 = vmatpush3.msra.mxu1 %v2921_v14 }
 0xbc9   :  { %v706_v56 = vpop.f32.mrb[6].mxu1 }
 0xbca   :  { %v717_v57 = vadd.f32 %v706_v56, %v2943_v19  ;;  %v2302_v58 = vpop.f32.mrb[7].mxu1  ;;  %v710_v60 = vadd.f32 %v706_v56, %v188_v59 }
 0xbcc   :  { %719 = vrot.lane.b32.xlu1 %v717_v57, %s2785_s3  ;;  %v2059_v61 = vmul.f32 -1.442695, %v710_v60  ;;  %v198_v60 = vadd.f32 %v2950_v23, %v2941_v16 }
 0xbce   :  { %2648 = vpow2.f32 %v2059_v61 }
 0xbd8   :  { %v2649_v62 = vpop.eup %2648 }
 0xbd9   :  { %v714_v63 = vadd.f32 1.0, %v2649_v62 }
 0xbdb   :  { %2650 = vrcp.f32 %v714_v63 }
 0xbe5   :  { %v2651_v0 = vpop.eup %2650 }
 0xbe6   :  { %v729_v7 = vsub.f32 1.0, %v2651_v0  ;;  %v735_v47 = vmul.f32 %v2651_v0, %v632_v54 }
 0xc3e   :  { %v720_v1 = vpop.permute.xlu1 %719 }
 0xc3f   :  { %v722_v2 = vmul.f32 %v2651_v0, %v720_v1 }
 0xc41   :  { %724 = vrot.lane.b32.xlu0 %v722_v2, %s2784_s17 }
 0xcb3   :  { %v725_v3 = vpop.permute.xlu0 %724 }
 0xcb4   :  { %v727_v4 = vadd.f32 %v725_v3, %v188_v59 }
 0xcb6   :  { %2652 = vtanh.f32 %v727_v4 }
 0xcc0   :  { %v2653_v5 = vpop.eup %2652 }
 0xcc1   :  { %731 = vrot.lane.b32.xlu1 %v2653_v5, %s2786_s26 }
 0xd33   :  { %v732_v8 = vpop.permute.xlu1 %731 }
 0xd34   :  { %v734_v10 = vmul.f32 %v732_v8, %v729_v7 }
 0xd36   :  { %v736_v12 = vadd.f32 %v735_v47, %v734_v10 }
 0xd38   :  { %738 = vrot.lane.b32.xlu0 %v736_v12, %s2786_s26 }
 0xdaa   :  { %v739_v17 = vpop.permute.xlu0 %738 }
 0xdab   :  { %741 = vst.msk [vmem:[#allocation2 + $0x20] sm:$0xff] %vm212_vm3, %v739_v17  ;;  %2314 = vmatmul.mubr.msk.f32.vlgmr.msra.gmra.mrb[10].mxu0 %vm212_vm3, %v739_v17  ;;  %v3098_v17 = vld [vmem:[%s3312_s7] ss:$0 sm:$0xff] }
 0xdac   :  { %2501 = vmatpush3.bf16.msra.mxu0 %v2887_v6  ;;  %2339 = vmatprep.mubr.msk.f32.mxu0 %vm2782_vm2, %v2783_v13  ;;  %v193_v6 = vadd.f32 %v2976_v46, %v2950_v23  ;;  %v1064_v46 = vld [vmem:[%s3311_s6 + $0x8] sm:$0xff] }
 0xdad   :  { %2502 = vmatprep.subr.bf16.mxu0 %v2781_v9  ;;  %v2505_v31 = vpack.c.bf16 %v1064_v46, %v1063_v30 }
 0xdaf   :  { %2506 = vmatprep.subr.bf16.mxu1 %v2505_v31 }
 0xdb0   :  { %2504 = vmatpush3.bf16.msra.mxu0 %v2902_v11 }
 0xdb1   :  { %2337 = vmatprep.subr.mxu0 %v2783_v13 }
 0xdb2   :  { %v1059_v50 = vld [vmem:[#allocation2 + $0x20] sm:$0xff] }
 0xdb4   :  { %2338 = vmatpush3.msra.mxu0 %v2921_v14 }
 0xe7e   :  { %v810_v18 = vpop.f32.mrb[10].mxu0 }
 0xe7f   :  { %v821_v20 = vadd.f32 %v810_v18, %v2943_v19  ;;  %v2315_v21 = vpop.f32.mrb[11].mxu0  ;;  %v814_v22 = vadd.f32 %v810_v18, %v193_v6 }
 0xe81   :  { %823 = vrot.lane.b32.xlu1 %v821_v20, %s2785_s3  ;;  %v2061_v24 = vmul.f32 -1.442695, %v814_v22 }
 0xe83   :  { %2654 = vpow2.f32 %v2061_v24 }
 0xe8d   :  { %v2655_v25 = vpop.eup %2654 }
 0xe8e   :  { %v818_v26 = vadd.f32 1.0, %v2655_v25  ;;  %v203_v25 = vadd.f32 %v2939_v15, %v2950_v23 }
 0xe90   :  { %2656 = vrcp.f32 %v818_v26 }
 0xe9a   :  { %v2657_v11 = vpop.eup %2656 }
 0xe9b   :  { %v833_v33 = vsub.f32 1.0, %v2657_v11  ;;  %v839_v35 = vmul.f32 %v2657_v11, %v736_v12 }
 0xef3   :  { %v824_v27 = vpop.permute.xlu1 %823 }
 0xef4   :  { %v826_v28 = vmul.f32 %v2657_v11, %v824_v27 }
 0xef6   :  { %828 = vrot.lane.b32.xlu0 %v826_v28, %s2784_s17 }
 0xf68   :  { %v829_v14 = vpop.permute.xlu0 %828 }
 0xf69   :  { %v831_v29 = vadd.f32 %v829_v14, %v193_v6 }
 0xf6b   :  { %2658 = vtanh.f32 %v831_v29 }
 0xf75   :  { %v2659_v32 = vpop.eup %2658 }
 0xf76   :  { %835 = vrot.lane.b32.xlu1 %v2659_v32, %s2786_s26 }
 0xfe8   :  { %v836_v34 = vpop.permute.xlu1 %835 }
 0xfe9   :  { %v838_v36 = vmul.f32 %v836_v34, %v833_v33 }
 0xfeb   :  { %v840_v37 = vadd.f32 %v839_v35, %v838_v36 }
 0xfed   :  { %842 = vrot.lane.b32.xlu0 %v840_v37, %s2786_s26 }
0x105f   :  { %v843_v41 = vpop.permute.xlu0 %842 }
0x1060   :  { %845 = vst.msk [vmem:[#allocation2 + $0x28] sm:$0xff] %vm212_vm3, %v843_v41  ;;  %2327 = vmatmul.mubr.msk.f32.vlgmr.msra.gmra.mrb[8].mxu1 %vm212_vm3, %v843_v41 }
0x1061   :  { %2508 = vmatpush3.bf16.msra.mxu1 %v2505_v31  ;;  %2352 = vmatprep.mubr.msk.f32.mxu1 %vm212_vm3, %v1055_v42 }
0x1062   :  { %2510 = vmatprep.subr.bf16.mxu1 %v2509_v40 }
0x1065   :  { %2512 = vmatpush3.bf16.msra.mxu1 %v2509_v40 }
0x1066   :  { %2350 = vmatprep.subr.mxu1 %v1067_v43 }
0x1067   :  { %v1060_v51 = vld [vmem:[#allocation2 + $0x28] sm:$0xff] }
0x1069   :  { %2351 = vmatpush3.msra.mxu1 %v1067_v43 }
0x106a   :  { %2353 = vmatmul.mubr.msk.f32.vlgmr.msra.gmra.mrb[10].mxu1 %vm212_vm3, %v1056_v45 }
0x106b   :  { %2355 = vmatprep.mubr.msk.f32.mxu1 %vm212_vm3, %v1057_v48 }
0x106e   :  { %2356 = vmatmul.mubr.msk.f32.gmra.mrb[12].mxu1 %vm212_vm3, %v1058_v49 }
0x106f   :  { %2358 = vmatprep.mubr.msk.f32.mxu1 %vm212_vm3, %v1059_v50 }
0x1072   :  { %2359 = vmatmul.mubr.msk.f32.gmra.mrb[14].mxu1 %vm212_vm3, %v1060_v51 }
0x1133   :  { %v914_v52 = vpop.f32.mrb[8].mxu1 }
0x1134   :  { %v925_v44 = vadd.f32 %v914_v52, %v2943_v19  ;;  %v2328_v53 = vpop.f32.mrb[9].mxu1  ;;  %v918_v61 = vadd.f32 %v914_v52, %v198_v60 }
0x1136   :  { %927 = vrot.lane.b32.xlu1 %v925_v44, %s2785_s3  ;;  %v2063_v62 = vmul.f32 -1.442695, %v918_v61 }
0x1138   :  { %2660 = vpow2.f32 %v2063_v62 }
0x113d   :  { %v2354_v54 = vpop.f32.mrb[10].mxu1 }
0x113e   :  { %v1165_v55 = vpop.f32.mrb[11].mxu1 }
0x113f   :  { %v1166_v18 = vadd.f32 %v3098_v17, %v1165_v55 }
0x1141   :  { %v3086_v56 = vpop.f32.mrb[12].mxu1 }
0x1142   :  { %v3088_v57 = vpop.f32.mrb[13].mxu1  ;;  %v2661_v63 = vpop.eup %2660  ;;  %v1181_v39 = vadd.f32 %v3086_v56, %v3098_v17 }
0x1143   :  { %v922_v0 = vadd.f32 1.0, %v2661_v63  ;;  %v1176_v40 = vadd.f32 %v3098_v17, %v3088_v57 }
0x1145   :  { %v2360_v58 = vpop.f32.mrb[14].mxu1  ;;  %2662 = vrcp.f32 %v922_v0  ;;  %v3133_v50 = vpack.i.bf16 %v1181_v39, %v1176_v40 }
0x1146   :  { %v1185_v59 = vpop.f32.mrb[15].mxu1  ;;  %v1191_v15 = vadd.f32 %v2360_v58, %v3098_v17 }
0x1147   :  { %v1186_v23 = vadd.f32 %v3098_v17, %v1185_v59 }
0x1149   :  { %v3118_v34 = vpack.i.bf16 %v1191_v15, %v1186_v23 }
0x114f   :  { %v2663_v1 = vpop.eup %2662 }
0x1150   :  { %v937_v8 = vsub.f32 1.0, %v2663_v1  ;;  %v943_v16 = vmul.f32 %v2663_v1, %v840_v37 }
0x11a8   :  { %v928_v2 = vpop.permute.xlu1 %927 }
0x11a9   :  { %v930_v3 = vmul.f32 %v2663_v1, %v928_v2 }
0x11ab   :  { %932 = vrot.lane.b32.xlu0 %v930_v3, %s2784_s17 }
0x121d   :  { %v933_v4 = vpop.permute.xlu0 %932 }
0x121e   :  { %v935_v5 = vadd.f32 %v933_v4, %v198_v60 }
0x1220   :  { %2664 = vtanh.f32 %v935_v5  ;;  %v1365_v5 = vlaneseq }
0x122a   :  { %v2665_v7 = vpop.eup %2664 }
0x122b   :  { %939 = vrot.lane.b32.xlu1 %v2665_v7, %s2786_s26  ;;  %v3172_v7 = vshrl.u32 %v1365_v5, 7 }
0x129d   :  { %v940_v47 = vpop.permute.xlu1 %939 }
0x129e   :  { %v942_v10 = vmul.f32 %v940_v47, %v937_v8  ;;  %v1367_v8 = vadd.s32 8, %v3172_v7  ;;  %v1375_v47 = vand.u32 127, %v1365_v5 }
0x12a0   :  { %v944_v12 = vadd.f32 %v943_v16, %v942_v10  ;;  %v1369_v16 = vadd.s32 24, %v3172_v7  ;;  %v1387_v10 = vand.u32 7, %v1367_v8 }
0x12a2   :  { %946 = vrot.lane.b32.xlu0 %v944_v12, %s2786_s26 }
0x1314   :  { %v947_v20 = vpop.permute.xlu0 %946 }
0x1315   :  { %949 = vst.msk [vmem:[#allocation2 + $0x30] sm:$0xff] %vm212_vm3, %v947_v20  ;;  %2340 = vmatmul.mubr.msk.f32.vlgmr.msra.gmra.mrb[12].mxu0 %vm212_vm3, %v947_v20  ;;  %v1401_v20 = vand.u32 7, %v1369_v16 }
0x1316   :  { %2380 = vmatprep.mubr.msk.f32.mxu0 %vm212_vm3, %v1166_v18 }
0x131c   :  { %v1061_v21 = vld [vmem:[#allocation2 + $0x30] sm:$0xff] }
0x131d   :  { %2361 = vmatprep.mubr.msk.f32.mxu1 %vm212_vm3, %v1061_v21  ;;  %v1371_v21 = vadd.s32 40, %v3172_v7 }
0x13e8   :  { %v1018_v6 = vpop.f32.mrb[12].mxu0 }
0x13e9   :  { %v1029_v22 = vadd.f32 %v1018_v6, %v2943_v19  ;;  %v2341_v24 = vpop.f32.mrb[13].mxu0  ;;  %v1022_v26 = vadd.f32 %v1018_v6, %v203_v25  ;;  %v1171_v19 = vadd.f32 %v2354_v54, %v3098_v17 }
0x13eb   :  { %1031 = vrot.lane.b32.xlu1 %v1029_v22, %s2785_s3  ;;  %v2065_v11 = vmul.f32 -1.442695, %v1022_v26  ;;  %v3114_v33 = vpack.i.bf16 %v1171_v19, %v1166_v18  ;;  %v1368_v18 = vadd.s32 16, %v3172_v7  ;;  %v1370_v22 = vadd.s32 32, %v3172_v7 }
0x13ed   :  { %2666 = vpow2.f32 %v2065_v11  ;;  %v1394_v6 = vand.u32 7, %v1368_v18 }
0x13f7   :  { %v2667_v27 = vpop.eup %2666 }
0x13f8   :  { %v1026_v28 = vadd.f32 1.0, %v2667_v27 }
0x13fa   :  { %2668 = vrcp.f32 %v1026_v28  ;;  %v1415_v28 = vand.u32 7, %v1371_v21 }
0x1404   :  { %v2669_v14 = vpop.eup %2668 }
0x1405   :  { %v1041_v35 = vsub.f32 1.0, %v2669_v14  ;;  %v1047_v37 = vmul.f32 %v2669_v14, %v944_v12  ;;  %v3176_v12 = vand.u32 7, %v1375_v47 }
0x1407   :  { %vm1485_vm5 = vcmp.eq.s32.totalorder %v1387_v10, %v3176_v12  ;;  %vm1487_vm8 = vcmp.eq.s32.totalorder %v1401_v20, %v3176_v12  ;;  %vm1486_vm9 = vcmp.eq.s32.totalorder %v1394_v6, %v3176_v12  ;;  %vm1489_vm10 = vcmp.eq.s32.totalorder %v1415_v28, %v3176_v12 }
0x1408   :  { %vm1766_vm14 = vcmp.eq.s32.totalorder %v3176_v12, %v3172_v7 }
0x145d   :  { %v1032_v29 = vpop.permute.xlu1 %1031 }
0x145e   :  { %v1034_v30 = vmul.f32 %v2669_v14, %v1032_v29  ;;  %v1373_v14 = vadd.s32 56, %v3172_v7 }
0x1460   :  { %1036 = vrot.lane.b32.xlu0 %v1034_v30, %s2784_s17  ;;  %v1408_v30 = vand.u32 7, %v1370_v22 }
0x1462   :  { %vm1488_vm11 = vcmp.eq.s32.totalorder %v1408_v30, %v3176_v12 }
0x14d2   :  { %v1037_v46 = vpop.permute.xlu0 %1036 }
0x14d3   :  { %v1039_v31 = vadd.f32 %v1037_v46, %v203_v25  ;;  %v1372_v46 = vadd.s32 48, %v3172_v7 }
0x14d5   :  { %2670 = vtanh.f32 %v1039_v31 }
0x14df   :  { %v2671_v32 = vpop.eup %2670 }
0x14e0   :  { %1043 = vrot.lane.b32.xlu1 %v2671_v32, %s2786_s26 }
0x14e4   :  { %2585 = vrot.lane.b32.xlu1 %v3114_v33, %s2786_s26 }
0x14e8   :  { %2595 = vrot.lane.b32.xlu1 %v3118_v34, %s2786_s26 }
0x1552   :  { %v1044_v36 = vpop.permute.xlu1 %1043 }
0x1553   :  { %v1046_v38 = vmul.f32 %v1044_v36, %v1041_v35  ;;  %v1429_v35 = vand.u32 7, %v1373_v14 }
0x1555   :  { %v1048_v41 = vadd.f32 %v1047_v37, %v1046_v38  ;;  %v1422_v37 = vand.u32 7, %v1372_v46  ;;  %vm1491_vm12 = vcmp.eq.s32.totalorder %v1429_v35, %v3176_v12 }
0x1556   :  { %v2586_v42 = vpop.permute.xlu1 %2585 }
0x1557   :  { %v2588_v43 = vunpack.i.h.bf16 %v2586_v42  ;;  %v2587_v45 = vunpack.i.l.bf16 %v2586_v42  ;;  %1050 = vrot.lane.b32.xlu0 %v1048_v41, %s2786_s26  ;;  %vm1490_vm13 = vcmp.eq.s32.totalorder %v1422_v37, %v3176_v12 }
0x1559   :  { %v2513_v49 = vpack.c.bf16 %v2588_v43, %v2587_v45 }
0x155a   :  { %v2596_v52 = vpop.permute.xlu1 %2595 }
0x155b   :  { %2590 = vrot.lane.b32.xlu0 %v3133_v50, %s2786_s26  ;;  %2515 = vmatprep.subr.msk.bf16.mxu0 %vm3129_vm4, %v2513_v49  ;;  %v2598_v53 = vunpack.i.h.bf16 %v2596_v52  ;;  %v2597_v54 = vunpack.i.l.bf16 %v2596_v52 }
0x155c   :  { %2518 = vmatpush3.bf16.xpose.msk.msra.mxu0 %vm3129_vm4, %v2513_v49 }
0x155d   :  { %v2525_v59 = vpack.c.bf16 %v2598_v53, %v2597_v54 }
0x15c9   :  { %v1051_v51 = vpop.permute.xlu0 %1050 }
0x15ca   :  { %1053 = vst.msk [vmem:[#allocation2 + $0x38] sm:$0xff] %vm212_vm3, %v1051_v51  ;;  %1054 = vst.msk [vmem:[#allocation7] sm:$0xff] %vm212_vm3, %v1051_v51 }
0x15cd   :  { %v2591_v44 = vpop.permute.xlu0 %2590 }
0x15ce   :  { %v2593_v55 = vunpack.i.h.bf16 %v2591_v44  ;;  %v2592_v56 = vunpack.i.l.bf16 %v2591_v44 }
0x15d0   :  { %v2519_v57 = vpack.c.bf16 %v2593_v55, %v2592_v56 }
0x15d1   :  { %v1062_v58 = vld [vmem:[#allocation2 + $0x38] sm:$0xff] }
0x15d2   :  { %2362 = vmatmul.mubr.msk.f32.gmra.mrb[16].mxu1 %vm212_vm3, %v1062_v58  ;;  %2521 = vmatprep.subr.msk.bf16.mxu0 %vm3129_vm4, %v2519_v57 }
0x15d3   :  { %2524 = vmatpush3.bf16.xpose.msk.msra.mxu0 %vm3129_vm4, %v2519_v57 }
0x15d4   :  { %2527 = vmatprep.subr.msk.bf16.mxu0 %vm3129_vm4, %v2525_v59 }
0x15db   :  { %2530 = vmatpush3.bf16.xpose.msk.msra.mxu0 %vm3129_vm4, %v2525_v59 }
0x16a5   :  { %v2363_v60 = vpop.f32.mrb[16].mxu1 }
0x16a6   :  { %v1201_v61 = vadd.f32 %v2363_v60, %v3098_v17  ;;  %v1195_v62 = vpop.f32.mrb[17].mxu1 }
0x16a7   :  { %v1196_v63 = vadd.f32 %v3098_v17, %v1195_v62  ;;  %v1380_v17 = vand.u32 7, %v3172_v7 }
0x16a9   :  { %v3154_v0 = vpack.i.bf16 %v1201_v61, %v1196_v63  ;;  %vm1484_vm6 = vcmp.eq.s32.totalorder %v1380_v17, %v3176_v12 }
0x16ab   :  { %2600 = vrot.lane.b32.xlu0 %v3154_v0, %s2786_s26 }
0x171d   :  { %v2601_v1 = vpop.permute.xlu0 %2600 }
0x171e   :  { %v2603_v2 = vunpack.i.h.bf16 %v2601_v1  ;;  %v2602_v3 = vunpack.i.l.bf16 %v2601_v1 }
0x1720   :  { %v2531_v4 = vpack.c.bf16 %v2603_v2, %v2602_v3 }
0x1722   :  { %2533 = vmatprep.subr.msk.bf16.mxu0 %vm3129_vm4, %v2531_v4 }
0x1723   :  { %2536 = vmatpush3.bf16.xpose.msk.msra.mxu0 %vm3129_vm4, %v2531_v4 }
0x1724   :  { %2565 = vmatprep.subr.bf16.mxu0 %v2781_v9 }
0x172a   :  { %2381 = vmatmul.mubr.msk.f32.vlgmr.msra.gmra.mrb[14].mxu0 %vm212_vm3, %v1171_v19 }
0x172b   :  { %2383 = vmatprep.mubr.msk.f32.mxu0 %vm212_vm3, %v1176_v40 }
0x172e   :  { %2384 = vmatmul.mubr.msk.f32.gmra.mrb[16].mxu0 %vm212_vm3, %v1181_v39 }
0x172f   :  { %2386 = vmatprep.mubr.msk.f32.mxu0 %vm212_vm3, %v1186_v23 }
0x1732   :  { %2387 = vmatmul.mubr.msk.f32.gmra.mrb[18].mxu0 %vm212_vm3, %v1191_v15 }
0x1733   :  { %2389 = vmatprep.mubr.msk.f32.mxu0 %vm212_vm3, %v1196_v63 }
0x1736   :  { %2390 = vmatmul.mubr.msk.f32.gmra.mrb[20].mxu0 %vm212_vm3, %v1201_v61 }
0x1737   :  { %2454 = vmatprep.mubr.msk.f32.mxu0 %vm2782_vm2, %v2783_v13 }
0x17fd   :  { %v2382_v24 = vpop.f32.mrb[14].mxu0 }
0x17fe   :  { %v1493_v25 = vsel %vm1485_vm5, %v2382_v24, -1e+30  ;;  %v1326_v26 = vpop.f32.mrb[15].mxu0 }
0x17ff   :  { %v1492_v11 = vsel %vm1484_vm6, %v1326_v26, -1e+30  ;;  %v1504_v27 = vsel %vm1500_vm7, %v1493_v25, -inf }
0x1800   :  { %1505 = vmax.xlane.f32.xlu0 %v1504_v27  ;;  %v1501_v29 = vsel %vm1500_vm7, %v1492_v11, -inf }
0x1801   :  { %1502 = vmax.xlane.f32.xlu1 %v1501_v29  ;;  %v2385_v31 = vpop.f32.mrb[16].mxu0 }
0x1802   :  { %v1495_v19 = vsel %vm1487_vm8, %v2385_v31, -1e+30  ;;  %v1336_v32 = vpop.f32.mrb[17].mxu0 }
0x1803   :  { %v1494_v15 = vsel %vm1486_vm9, %v1336_v32, -1e+30  ;;  %v1510_v23 = vsel %vm1500_vm7, %v1495_v19, -inf }
0x1804   :  { %v1507_v36 = vsel %vm1500_vm7, %v1494_v15, -inf }
0x1805   :  { %1511 = vmax.xlane.f32.xlu1 %v1510_v23  ;;  %1508 = vmax.xlane.f32.xlu0 %v1507_v36  ;;  %v2388_v38 = vpop.f32.mrb[18].mxu0 }
0x1806   :  { %v1497_v39 = vsel %vm1489_vm10, %v2388_v38, -1e+30  ;;  %v1346_v40 = vpop.f32.mrb[19].mxu0 }
0x1807   :  { %v1496_v41 = vsel %vm1488_vm11, %v1346_v40, -1e+30  ;;  %v1516_v42 = vsel %vm1500_vm7, %v1497_v39, -inf }
0x1808   :  { %v1513_v43 = vsel %vm1500_vm7, %v1496_v41, -inf }
0x1809   :  { %1517 = vmax.xlane.f32.xlu1 %v1516_v42  ;;  %1514 = vmax.xlane.f32.xlu0 %v1513_v43  ;;  %v2391_v45 = vpop.f32.mrb[20].mxu0 }
0x180a   :  { %v1499_v48 = vsel %vm1491_vm12, %v2391_v45, -1e+30  ;;  %v1356_v49 = vpop.f32.mrb[21].mxu0 }
0x180b   :  { %v1498_v51 = vsel %vm1490_vm13, %v1356_v49, -1e+30  ;;  %v1522_v52 = vsel %vm1500_vm7, %v1499_v48, -inf }
0x180c   :  { %v1519_v44 = vsel %vm1500_vm7, %v1498_v51, -inf }
0x180d   :  { %1523 = vmax.xlane.f32.xlu1 %v1522_v52  ;;  %1520 = vmax.xlane.f32.xlu0 %v1519_v44 }
0x181e   :  { %2610 = vrot.lane.b32.xlu1 %v3133_v50, %s2785_s3 }
0x1823   :  { %2605 = vrot.lane.b32.xlu0 %v3114_v33, %s2785_s3 }
0x188d   :  { %v1506_v53 = vpop.xlane.xlu0 %1505 }
0x188e   :  { %v1526_v54 = vsub.f32 %v1493_v25, %v1506_v53  ;;  %v1503_v55 = vpop.xlane.xlu1 %1502 }
0x188f   :  { %v1525_v56 = vsub.f32 %v1492_v11, %v1503_v55 }
0x1890   :  { %v1535_v57 = vmul.f32 1.442695, %v1526_v54 }
0x1891   :  { %v1533_v58 = vmul.f32 1.442695, %v1525_v56 }
0x1892   :  { %2672 = vpow2.f32 %v1535_v57  ;;  %v1512_v59 = vpop.xlane.xlu1 %1511  ;;  %v1509_v60 = vpop.xlane.xlu0 %1508 }
0x1893   :  { %2674 = vpow2.f32 %v1533_v58  ;;  %v1528_v61 = vsub.f32 %v1495_v19, %v1512_v59  ;;  %v1527_v62 = vsub.f32 %v1494_v15, %v1509_v60 }
0x1895   :  { %v1539_v63 = vmul.f32 1.442695, %v1528_v61  ;;  %v1537_v1 = vmul.f32 1.442695, %v1527_v62 }
0x1896   :  { %v1518_v2 = vpop.xlane.xlu1 %1517  ;;  %v1515_v3 = vpop.xlane.xlu0 %1514 }
0x1897   :  { %2676 = vpow2.f32 %v1539_v63  ;;  %v1530_v50 = vsub.f32 %v1497_v39, %v1518_v2  ;;  %v1529_v4 = vsub.f32 %v1496_v41, %v1515_v3 }
0x1898   :  { %2678 = vpow2.f32 %v1537_v1 }
0x1899   :  { %v1543_v33 = vmul.f32 1.442695, %v1530_v50  ;;  %v1541_v5 = vmul.f32 1.442695, %v1529_v4 }
0x189a   :  { %v1524_v8 = vpop.xlane.xlu1 %1523  ;;  %v1521_v47 = vpop.xlane.xlu0 %1520 }
0x189b   :  { %2680 = vpow2.f32 %v1543_v33  ;;  %v1532_v16 = vsub.f32 %v1499_v48, %v1524_v8  ;;  %v1531_v10 = vsub.f32 %v1498_v51, %v1521_v47 }
0x189c   :  { %v3204_v17 = vpop.eup %2672  ;;  %2682 = vpow2.f32 %v1541_v5 }
0x189d   :  { %v3206_v18 = vpop.eup %2674  ;;  %v1547_v20 = vmul.f32 1.442695, %v1532_v16  ;;  %v1545_v21 = vmul.f32 1.442695, %v1531_v10  ;;  %v1552_v6 = vsel %vm1500_vm7, %v3204_v17, 0.0 }
0x189e   :  { %1553 = vadd.xlane.f32.xlu1 %v1552_v6  ;;  %v2611_v22 = vpop.permute.xlu1 %2610  ;;  %v2606_v24 = vpop.permute.xlu0 %2605  ;;  %v1549_v25 = vsel %vm1500_vm7, %v3206_v18, 0.0 }
0x189f   :  { %2684 = vpow2.f32 %v1547_v20  ;;  %v2608_v26 = vunpack.i.h.bf16 %v2606_v24  ;;  %1550 = vadd.xlane.f32.xlu0 %v1549_v25  ;;  %v2613_v11 = vunpack.i.h.bf16 %v2611_v22  ;;  %v2612_v27 = vunpack.i.l.bf16 %v2611_v22 }
0x18a0   :  { %2686 = vpow2.f32 %v1545_v21  ;;  %v2607_v28 = vunpack.i.l.bf16 %v2606_v24 }
0x18a1   :  { %v3212_v14 = vpop.eup %2676  ;;  %v2541_v19 = vpack.c.bf16 %v2613_v11, %v2612_v27 }
0x18a2   :  { %v3214_v29 = vpop.eup %2678  ;;  %v2537_v30 = vpack.c.bf16 %v2608_v26, %v2607_v28  ;;  %v1558_v46 = vsel %vm1500_vm7, %v3212_v14, 0.0 }
0x18a3   :  { %1559 = vadd.xlane.f32.xlu1 %v1558_v46  ;;  %v1555_v31 = vsel %vm1500_vm7, %v3214_v29, 0.0 }
0x18a4   :  { %1556 = vadd.xlane.f32.xlu0 %v1555_v31  ;;  %2538 = vmatprep.subr.bf16.mxu1 %v2537_v30 }
0x18a5   :  { %v3220_v32 = vpop.eup %2680  ;;  %2540 = vmatpush3.bf16.msra.mxu1 %v2537_v30 }
0x18a6   :  { %v3222_v15 = vpop.eup %2682  ;;  %2542 = vmatprep.subr.bf16.mxu1 %v2541_v19  ;;  %v1564_v23 = vsel %vm1500_vm7, %v3220_v32, 0.0 }
0x18a7   :  { %1565 = vadd.xlane.f32.xlu1 %v1564_v23  ;;  %v1561_v35 = vsel %vm1500_vm7, %v3222_v15, 0.0 }
0x18a8   :  { %1562 = vadd.xlane.f32.xlu0 %v1561_v35 }
0x18a9   :  { %v3228_v36 = vpop.eup %2684  ;;  %2544 = vmatpush3.bf16.msra.mxu1 %v2541_v19 }
0x18aa   :  { %v3230_v37 = vpop.eup %2686  ;;  %v1570_v38 = vsel %vm1500_vm7, %v3228_v36, 0.0 }
0x18ab   :  { %1571 = vadd.xlane.f32.xlu1 %v1570_v38  ;;  %v1567_v39 = vsel %vm1500_vm7, %v3230_v37, 0.0 }
0x18ac   :  { %1568 = vadd.xlane.f32.xlu0 %v1567_v39 }
0x18bc   :  { %2615 = vrot.lane.b32.xlu1 %v3118_v34, %s2785_s3 }
0x18c2   :  { %2620 = vrot.lane.b32.xlu0 %v3154_v0, %s2785_s3 }
0x192b   :  { %v1554_v40 = vpop.xlane.xlu1 %1553 }
0x192c   :  { %v1551_v41 = vpop.xlane.xlu0 %1550 }
0x192d   :  { %2688 = vrcp.f32 %v1551_v41 }
0x192e   :  { %2690 = vrcp.f32 %v1554_v40 }
0x1930   :  { %v1560_v42 = vpop.xlane.xlu1 %1559 }
0x1931   :  { %2692 = vrcp.f32 %v1560_v42  ;;  %v1557_v43 = vpop.xlane.xlu0 %1556 }
0x1932   :  { %2694 = vrcp.f32 %v1557_v43 }
0x1934   :  { %v1566_v45 = vpop.xlane.xlu1 %1565 }
0x1935   :  { %2696 = vrcp.f32 %v1566_v45  ;;  %v1563_v48 = vpop.xlane.xlu0 %1562 }
0x1936   :  { %2698 = vrcp.f32 %v1563_v48 }
0x1937   :  { %v2689_v49 = vpop.eup %2688 }
0x1938   :  { %v2691_v51 = vpop.eup %2690  ;;  %v1581_v52 = vmul.f32 %v2689_v49, %v1551_v41  ;;  %v1572_v44 = vpop.xlane.xlu1 %1571  ;;  %v1844_v41 = vld [vmem:[#allocation3 + $0x10] sm:$0xff] }
0x1939   :  { %2700 = vrcp.f32 %v1572_v44  ;;  %v1569_v34 = vpop.xlane.xlu0 %1568  ;;  %v1582_v54 = vmul.f32 %v2691_v51, %v1554_v40  ;;  %v1843_v40 = vld [vmem:[#allocation3 + $0x8] sm:$0xff] }
0x193a   :  { %v1589_v53 = vsub.f32 2.0, %v1581_v52  ;;  %2702 = vrcp.f32 %v1569_v34 }
0x193b   :  { %v2693_v0 = vpop.eup %2692  ;;  %v1590_v3 = vsub.f32 2.0, %v1582_v54 }
0x193c   :  { %v2695_v55 = vpop.eup %2694  ;;  %v1597_v56 = vmul.f32 %v2689_v49, %v1589_v53  ;;  %v2616_v57 = vpop.permute.xlu1 %2615  ;;  %v1584_v50 = vmul.f32 %v2693_v0, %v1560_v42 }
0x193d   :  { %v1583_v58 = vmul.f32 %v2695_v55, %v1557_v43  ;;  %v2618_v59 = vunpack.i.h.bf16 %v2616_v57  ;;  %v2617_v60 = vunpack.i.l.bf16 %v2616_v57  ;;  %v2621_v61 = vpop.permute.xlu0 %2620  ;;  %v1598_v10 = vmul.f32 %v2691_v51, %v1590_v3  ;;  %v1845_v43 = vld [vmem:[#allocation3 + $0x18] sm:$0xff]  ;;  %v1848_v57 = vld [vmem:[%s3314_s9] sm:$0x7]  ;;  %s2787_s9 = smov [#allocation7]  }
0x193e   :  { %v1605_v62 = vmul.f32 %v3206_v18, %v1597_v56  ;;  %v2623_v63 = vunpack.i.h.bf16 %v2621_v61  ;;  %v2622_v1 = vunpack.i.l.bf16 %v2621_v61  ;;  %v1592_v20 = vsub.f32 2.0, %v1584_v50  ;;  %s2027_s20 = sshll.u32 %s2787_s9, 4  ;;  %s2028_s20 = int_to_ptr.vmem [resolvable:$true] %s2027_s20 }
0x193f   :  { %v2697_v2 = vpop.eup %2696  ;;  %v2545_v4 = vpack.c.bf16 %v2618_v59, %v2617_v60  ;;  %v1591_v5 = vsub.f32 2.0, %v1583_v58  ;;  %v1606_v25 = vmul.f32 %v3204_v17, %v1598_v10  ;;  %v2099_v56 = vsel %vm1766_vm14, 1.0, %v2783_v13  ;;  %s2728_s21 = scalar_lea.vmem %s2028_s20, 128  ;;  %p2733_p9 = scmp.lt.s32.totalorder %s2028_s20, %s2028_s20 }
0x1940   :  { %v2699_v33 = vpop.eup %2698  ;;  %2408 = vmatprep.mubr.msk.f32.mxu1 %vm1500_vm7, %v1605_v62  ;;  %v2549_v47 = vpack.c.bf16 %v2623_v63, %v2622_v1  ;;  %v1586_v21 = vmul.f32 %v2697_v2, %v1566_v45  ;;  %v1600_v26 = vmul.f32 %v2693_v0, %v1592_v20  ;;  %p2729_p8 = scmp.ne.s32.totalorder %s2028_s20, %s2728_s21  ;;  %p2734_p10 = scmp.lt.s32.totalorder %s2728_s21, %s2728_s21 }
0x1941   :  { %v1585_v8 = vmul.f32 %v2699_v33, %v1563_v48  ;;  %2546 = vmatprep.subr.bf16.mxu1 %v2545_v4  ;;  %v1599_v6 = vmul.f32 %v2695_v55, %v1591_v5 }
0x1942   :  { %2548 = vmatpush3.bf16.msra.mxu1 %v2545_v4  ;;  %v1594_v11 = vsub.f32 2.0, %v1586_v21  ;;  %v1608_v31 = vmul.f32 %v3212_v14, %v1600_v26  ;;  %p2735_p11 = por %p2734_p10, %p2733_p9 }
0x1943   :  { %v2701_v16 = vpop.eup %2700  ;;  %2550 = vmatprep.subr.bf16.mxu1 %v2549_v47  ;;  %v1593_v22 = vsub.f32 2.0, %v1585_v8  ;;  %v1607_v28 = vmul.f32 %v3214_v29, %v1599_v6 }
0x1944   :  { %v2703_v18 = vpop.eup %2702  ;;  %v1588_v27 = vmul.f32 %v2701_v16, %v1572_v44  ;;  %v1602_v19 = vmul.f32 %v2697_v2, %v1594_v11  ;;  %p2736_p12 = pnand %p2735_p11, %p2729_p8 }
0x1945   :  { %v1587_v24 = vmul.f32 %v2703_v18, %v1569_v34  ;;  %v1601_v30 = vmul.f32 %v2699_v33, %v1593_v22 }
0x1946   :  { %2552 = vmatpush3.bf16.msra.mxu1 %v2549_v47  ;;  %v1596_v23 = vsub.f32 2.0, %v1588_v27  ;;  %v1610_v38 = vmul.f32 %v3220_v32, %v1602_v19  ;;  %v2569_v32 = vpack.c.bf16 %v1845_v43, %v1844_v41 }
0x1947   :  { %2553 = vmatprep.subr.bf16.mxu1 %v2781_v9  ;;  %v1595_v46 = vsub.f32 2.0, %v1587_v24  ;;  %v1609_v35 = vmul.f32 %v3222_v15, %v1601_v30  ;;  %v1842_v15 = vld [vmem:[#allocation3] sm:$0xff] }
0x1948   :  { %v1604_v29 = vmul.f32 %v2701_v16, %v1596_v23  ;;  %v2566_v42 = vpack.c.bf16 %v1843_v40, %v1842_v15 }
0x1949   :  { %2409 = vmatmul.mubr.msk.f32.vlgmr.msra.gmra.mrb[18].mxu1 %vm1500_vm7, %v1606_v25  ;;  %v1603_v17 = vmul.f32 %v2703_v18, %v1595_v46 }
0x194a   :  { %2411 = vmatprep.mubr.msk.f32.mxu1 %vm1500_vm7, %v1607_v28  ;;  %v1612_v14 = vmul.f32 %v3228_v36, %v1604_v29  ;;  %2567 = vmatpush3.bf16.msra.mxu0 %v2566_v42 }
0x194b   :  { %v1611_v39 = vmul.f32 %v3230_v37, %v1603_v17  ;;  %2568 = vmatprep.subr.bf16.mxu0 %v2781_v9  ;;  %v1846_v37 = vld [vmem:[#allocation3 + $0x20] sm:$0xff] }
0x194d   :  { %2412 = vmatmul.mubr.msk.f32.gmra.mrb[20].mxu1 %vm1500_vm7, %v1608_v31 }
0x194e   :  { %2414 = vmatprep.mubr.msk.f32.mxu1 %vm1500_vm7, %v1609_v35  ;;  %2570 = vmatpush3.bf16.msra.mxu0 %v2569_v32 }
0x194f   :  { %2452 = vmatprep.subr.mxu0 %v2783_v13 }
0x1951   :  { %2415 = vmatmul.mubr.msk.f32.gmra.mrb[22].mxu1 %vm1500_vm7, %v1610_v38 }
0x1952   :  { %2417 = vmatprep.mubr.msk.f32.mxu1 %vm1500_vm7, %v1611_v39  ;;  %2453 = vmatpush3.msra.mxu0 %v1846_v37 }
0x1955   :  { %2418 = vmatmul.mubr.msk.f32.gmra.mrb[24].mxu1 %vm1500_vm7, %v1612_v14 }
0x1956   :  { %2436 = vmatprep.mubr.msk.f32.mxu1 %vm2782_vm2, %v2783_v13 }
0x1a1c   :  { %v2410_v36 = vpop.f32.mrb[18].mxu1 }
0x1a1d   :  { %v1727_v45 = vpop.f32.mrb[19].mxu1 }
0x1a1e   :  { %v2554_v48 = vpack.c.bf16 %v2410_v36, %v1727_v45 }
0x1a20   :  { %v2413_v49 = vpop.f32.mrb[20].mxu1  ;;  %2555 = vmatpush3.bf16.msra.mxu1 %v2554_v48 }
0x1a21   :  { %v1737_v51 = vpop.f32.mrb[21].mxu1  ;;  %2556 = vmatprep.subr.bf16.mxu1 %v2781_v9 }
0x1a22   :  { %v2557_v52 = vpack.c.bf16 %v2413_v49, %v1737_v51 }
0x1a24   :  { %v2416_v44 = vpop.f32.mrb[22].mxu1  ;;  %2558 = vmatpush3.bf16.msra.mxu1 %v2557_v52 }
0x1a25   :  { %v1747_v34 = vpop.f32.mrb[23].mxu1  ;;  %2559 = vmatprep.subr.bf16.mxu1 %v2781_v9 }
0x1a26   :  { %v2560_v53 = vpack.c.bf16 %v2416_v44, %v1747_v34 }
0x1a28   :  { %v2419_v0 = vpop.f32.mrb[24].mxu1  ;;  %2561 = vmatpush3.bf16.msra.mxu1 %v2560_v53 }
0x1a29   :  { %v1757_v54 = vpop.f32.mrb[25].mxu1  ;;  %2562 = vmatprep.subr.bf16.mxu1 %v2781_v9  ;;  %v1847_v9 = vld [vmem:[%s3306_s1] sm:$0xff] }
0x1a2a   :  { %v2563_v55 = vpack.c.bf16 %v2419_v0, %v1757_v54 }
0x1a2c   :  { %2564 = vmatpush3.bf16.msra.mxu1 %v2563_v55 }
0x1a2d   :  { %2439 = vmatprep.subr.mxu1 %v2783_v13 }
0x1a2f   :  { %2437 = vmatmul.mubr.msk.f32.vlgmr.msra.gmra.mrb[26].mxu1 %vm1500_vm7, %v2099_v56 }
0x1a30   :  { %2440 = vmatpush3.msk.msra.mxu1 %vm1853_vm15, %v1848_v57  ;;  %2441 = vmatprep.mubr.msk.f32.mxu1 %vm2782_vm2, %v2783_v13 }
0x1a33   :  { %2442 = vmatmul.mubr.msk.f32.vlgmr.msra.gmra.mrb[28].mxu1 %vm1849_vm0, %v1847_v9 }
0x1b02   :  { %v1838_v7 = vpop.f32.mrb[26].mxu1 }
0x1b03   :  { %v2438_v12 = vpop.f32.mrb[27].mxu1  ;;  %2455 = vmatmul.mubr.msk.f32.vlgmr.msra.gmra.mrb[22].mxu0 %vm212_vm3, %v1838_v7 }
0x1b06   :  { %v1923_v58 = vpop.f32.mrb[28].mxu1 }
0x1b07   :  { %v2443_v59 = vpop.f32.mrb[29].mxu1 }
0x1b08   :  { %2739 = shalt.err (!%p2736_p12)
}
0x1b09   :  { %s2740_s4 = scalar_lea.hbm %s3317_s12, 128 }
0x1b0a   :  { %p2741_p13 = scmp.ne.s32.totalorder %s3317_s12, %s2740_s4  ;;  %p2744_p0 = scmp.lt.u32.totalorder %s2740_s4, %s3317_s12 }
0x1b0c   :  { %p2746_p1 = pnand %p2744_p0, %p2741_p13 }
0x1b0e   :  { %2749 = shalt.err (!%p2746_p1)
}
0x1b0f   :  { %2030 = dma.vmem_to_hbm [thread:$0]  %s2028_s20, 128, %s3317_s12, [#allocation8]   ;;  %v2104_v60 = vld [vmem:[%s3315_s10] ss:$0 sm:$0xff]  ;;  %vm2009_vm1 = vcmask 408576  }
0x1b10   :  { %s2788_s28 = smov [#allocation6]  }
0x1b11   :  { %s2017_s29 = sshll.u32 %s2788_s28, 4  ;;  %s2018_s29 = int_to_ptr.vmem [resolvable:$true] %s2017_s29 }
0x1b12   :  { %s2750_s30 = scalar_lea.vmem %s2018_s29, 128  ;;  %p2755_p3 = scmp.lt.s32.totalorder %s2018_s29, %s2018_s29 }
0x1b13   :  { %p2751_p2 = scmp.ne.s32.totalorder %s2018_s29, %s2750_s30  ;;  %p2756_p4 = scmp.lt.s32.totalorder %s2750_s30, %s2750_s30 }
0x1b15   :  { %p2757_p5 = por %p2756_p4, %p2755_p3 }
0x1b17   :  { %p2758_p6 = pnand %p2757_p5, %p2751_p2 }
0x1bd6   :  { %v1996_v13 = vpop.f32.mrb[22].mxu0 }
0x1bd7   :  { %v1997_v61 = vadd.f32 %v1996_v13, %v1923_v58  ;;  %v2456_v62 = vpop.f32.mrb[23].mxu0 }
0x1bd9   :  { %v2007_v63 = vadd.f32 %v2104_v60, %v1997_v61 }
0x1bdb   :  { %2704 = vtanh.f32 %v2007_v63 }
0x1be5   :  { %v2705_v1 = vpop.eup %2704 }
0x1be6   :  { %2010 = vst.msk [vmem:[#allocation6] sm:$0xff] %vm2009_vm1, %v2705_v1 }
0x1be7   :  { %2761 = shalt.err (!%p2758_p6)
}
0x1be8   :  { %s2762_s10 = scalar_lea.hbm %s3316_s11, 128 }
0x1be9   :  { %p2763_p7 = scmp.ne.s32.totalorder %s3316_s11, %s2762_s10  ;;  %p2766_p8 = scmp.lt.u32.totalorder %s2762_s10, %s3316_s11 }
0x1beb   :  { %p2768_p9 = pnand %p2766_p8, %p2763_p7 }
0x1bed   :  { %2771 = shalt.err (!%p2768_p9)
}
0x1bee   :  { %2020 = dma.vmem_to_hbm [thread:$0]  %s2018_s29, 128, %s3316_s11, [#allocation5]  }
0x1bef   :  { %2774 = dma.done.wait [#allocation5], 128  }
0x1bf0   :  { %2775 = vsyncadd [#allocation5], 4294967168 }
0x1bf1   :  { %2776 = dma.done.wait [#allocation8], 128  }
0x1bf2   :  { %2777 = vsyncadd [#allocation8], 4294967168 }
0x1bf3   :  { %2037 = vsyncpa [#allocation4], 1 }
0x1bf4   :  { %2038 = vsyncpa [#allocation5], 1 }
0x1bf5   :  { %2039 = vsyncpa [#allocation8], 1 }

</bundles_post_ra>
